<compile_context>
chip_gen: v6e
topology: v6e:2x2x1
jax: 0.10.0
libtpu: 0.0.40
codegen_flags: <defaults>
</compile_context>

<pallas_src>
import math
import jax
import jax.numpy as jnp
from jax import lax
from jax.experimental import pallas as pl
from jax.experimental.pallas import tpu as pltpu

# ----------------------- small synthetic hyper-parameters -----------------------
NOTES       = 16                 # hp.Notes
DURATIONS   = 32                 # hp.Durations
ENC_SIZE    = 32                 # hp.Encoder.Size (must be even)
EMB_DIM     = ENC_SIZE // 2
NUM_HEADS   = 2                  # hp.Encoder.Melody_Encoder.Head
HEAD_DIM    = ENC_SIZE // NUM_HEADS
KERNEL_SIZE = 3                  # hp.Encoder.Melody_Encoder.FFN.Kernel_Size
PAD         = (KERNEL_SIZE - 1) // 2
FFN_DIM     = 4 * ENC_SIZE
NUM_BLOCKS  = 2                  # hp.Encoder.Melody_Encoder.Stack


# ------------------------------- kernel helpers ---------------------------------
def _layer_norm(x, g, b, eps=1e-5):
    mu = jnp.mean(x, axis=-1, keepdims=True)
    var = jnp.mean((x - mu) ** 2, axis=-1, keepdims=True)
    return (x - mu) * lax.rsqrt(var + eps) * g + b


def _shift_rows(x, off):
    """Value-level row shift: out[m] ~= x[m + off]. Rows whose source falls outside
    the stacked activation are zero; rows whose source crosses a *sequence*
    boundary are garbage here and are zeroed by the per-tap masks."""
    if off == 0:
        return x
    pad = jnp.zeros((abs(off), x.shape[1]), x.dtype)
    if off > 0:
        return jnp.concatenate([x[off:, :], pad], axis=0)
    return jnp.concatenate([pad, x[:off, :]], axis=0)


def _conv_same(x, w_flat, bias, tap_masks):
    """'same' conv along time via im2col on the stacked [Bblk*T, Cin] activation:
    K row-shifted copies (masked at sequence boundaries) lane-concatenated into
    [M, K*Cin], then ONE wide matmul with the pre-flattened [K*Cin, Cout] weight."""
    cols = jnp.concatenate(
        [_shift_rows(x, k - PAD) * tap_masks[k] for k in range(KERNEL_SIZE)],
        axis=-1)
    return jnp.dot(cols.astype(jnp.bfloat16), w_flat,
                   preferred_element_type=jnp.float32) + bias


# --------------------------- fused Melody_Encoder kernel -------------------------
def melody_encoder_kernel(len_ref,                      # VMEM [Bblk, 1, 1] int32
                          note_ref, dur_ref,            # VMEM [Bblk, T, 1] int32
                          alpha_ref,                    # SMEM [1, 1]
                          note_tab_ref, dur_tab_ref,    # VMEM [NOTES, E], [DUR, E] bf16
                          wqkv_ref, bqkv_ref,           # [NB, C, 3C] bf16, [NB, 1, 3C] f32
                          wo_ref, bo_ref,               # [NB, C, C]  bf16, [NB, 1, C]  f32
                          ln1g_ref, ln1b_ref,           # [NB, 1, C] f32
                          w1f_ref, b1_ref,              # [NB, K*C, F] bf16, [NB, 1, F] f32
                          w2f_ref, b2_ref,              # [NB, K*F, C] bf16, [NB, 1, C] f32
                          ln2g_ref, ln2b_ref,           # [NB, 1, C] f32
                          out_ref):                     # [Bblk, T, C] f32 (lane-dense)
    Bb, T, _ = note_ref.shape
    M = Bb * T
    C = ENC_SIZE

    # ------- masks / block-diagonal attention bias from the lengths block -------
    lens = len_ref[...]                                                    # [Bb,1,1]
    t_row = lax.broadcasted_iota(jnp.int32, (Bb, T, 1), 1)
    m_row = (t_row < lens).astype(jnp.float32).reshape(M, 1)               # time mask
    seq_row = lax.broadcasted_iota(jnp.int32, (Bb, T, 1), 0).reshape(M, 1)

    t_col = lax.broadcasted_iota(jnp.int32, (1, Bb, T), 2)
    valid_col = (t_col < lens.reshape(1, Bb, 1)).astype(jnp.int32).reshape(1, M)
    seq_col = lax.broadcasted_iota(jnp.int32, (1, Bb, T), 1).reshape(1, M)

    # a query only attends to valid keys of its OWN sequence (sequences are
    # stacked along the row axis), so cross-sequence scores are masked out
    key_bias = jnp.where((seq_row == seq_col) & (valid_col > 0), 0.0, -1e9)  # [M,M]

    # per-tap shift-validity masks shared by both convs (stop cross-sequence leak)
    t_flat = t_row.reshape(M, 1)
    tap_masks = []
    for k in range(KERNEL_SIZE):
        src = t_flat + (k - PAD)
        tap_masks.append(((src >= 0) & (src <= T - 1)).astype(jnp.float32))

    # -------- embedding "gather" as exact one-hot matmuls (tables in VMEM) --------
    note_oh = (note_ref[...].reshape(M, 1) ==
               lax.broadcasted_iota(jnp.int32, (1, NOTES), 1)).astype(jnp.bfloat16)
    dur_oh = (dur_ref[...].reshape(M, 1) ==
              lax.broadcasted_iota(jnp.int32, (1, DURATIONS), 1)).astype(jnp.bfloat16)
    note_emb = jnp.dot(note_oh, note_tab_ref[...], preferred_element_type=jnp.float32)
    dur_emb = jnp.dot(dur_oh, dur_tab_ref[...], preferred_element_type=jnp.float32)

    alpha = alpha_ref[0, 0]
    x = jnp.concatenate([note_emb, alpha * dur_emb], axis=-1) * m_row      # [M, C] f32

    scale = 1.0 / math.sqrt(HEAD_DIM)

    for i in range(NUM_BLOCKS):                      # static unroll over FFT blocks
        # ------------- multi-head self attention (fused QKV matmul) -------------
        qkv = jnp.dot(x.astype(jnp.bfloat16), wqkv_ref[i],
                      preferred_element_type=jnp.float32) + bqkv_ref[i]    # [M, 3C]
        wo_i = wo_ref[i]                                                   # [C, C] bf16
        attn = None
        for h in range(NUM_HEADS):
            sl = slice(h * HEAD_DIM, (h + 1) * HEAD_DIM)
            qh = qkv[:, sl].astype(jnp.bfloat16)
            kh = qkv[:, C + h * HEAD_DIM: C + (h + 1) * HEAD_DIM].astype(jnp.bfloat16)
            vh = qkv[:, 2 * C + h * HEAD_DIM: 2 * C + (h + 1) * HEAD_DIM].astype(jnp.bfloat16)
            s = lax.dot_general(qh, kh, (((1,), (1,)), ((), ())),
                                preferred_element_type=jnp.float32)        # [M, M]
            s = s * scale + key_bias
            s = s - jnp.max(s, axis=-1, keepdims=True)
            e = jnp.exp(s)
            p = e * pl.reciprocal(jnp.sum(e, axis=-1, keepdims=True), approx=True)
            hv = jnp.dot(p.astype(jnp.bfloat16), vh,
                         preferred_element_type=jnp.float32)               # [M, Hd]
            # fold the head concatenate into the output projection
            proj = jnp.dot(hv.astype(jnp.bfloat16), wo_i[sl, :],
                           preferred_element_type=jnp.float32)             # [M, C]
            attn = proj if attn is None else attn + proj
        attn = attn + bo_ref[i]

        x = _layer_norm(x + attn, ln1g_ref[i], ln1b_ref[i]) * m_row

        # ---------------------------- conv FFN (im2col) ----------------------------
        h1 = _conv_same(x, w1f_ref[i], b1_ref[i], tap_masks)
        h1 = jnp.maximum(h1, 0.0)                    # ReLU (dropout == identity)
        # TODO(synk): reference FFT_Block source unavailable; h1 is intentionally NOT
        #             re-masked between the two convs (standard FastSpeech FFN).
        y = _conv_same(h1, w2f_ref[i], b2_ref[i], tap_masks)

        x = _layer_norm(x + y, ln2g_ref[i], ln2b_ref[i]) * m_row

    # final `encodings * float_masks` already applied; lane-dense [Bblk, T, C] store
    out_ref[...] = x.reshape(Bb, T, C)


# ----------------------------------- wrapper --------------------------------------
def _choose_bblk(B, T, max_rows=128, target_steps=4):
    """Pick how many sequences to stack per grid step: prefer the largest Bblk that
    still leaves >= target_steps grid steps (2 per TensorCore on v7x); otherwise
    maximize rows per step (MXU occupancy dominates at small B)."""
    divisors = [d for d in range(1, B + 1) if B % d == 0 and d * T <= max_rows]
    if not divisors:
        return 1
    good = [d for d in divisors if B // d >= target_steps]
    return max(good) if good else max(divisors)


def melody_encoder_forward(notes, durations, lengths, params, block_batch=None):
    """notes/durations: int32 [B, T]; lengths: int32 [B] -> out [B, ENC_SIZE, T]."""
    B, T = notes.shape
    C = ENC_SIZE
    bblk = block_batch or _choose_bblk(B, T)
    assert B % bblk == 0

    bp = params["blocks"]
    # flatten conv weights to (K*Cin, Cout) for the single im2col matmul; bf16 operands
    w1f = bp["w1"].reshape(NUM_BLOCKS, KERNEL_SIZE * C, FFN_DIM).astype(jnp.bfloat16)
    w2f = bp["w2"].reshape(NUM_BLOCKS, KERNEL_SIZE * FFN_DIM, C).astype(jnp.bfloat16)
    wqkv = bp["wqkv"].astype(jnp.bfloat16)
    wo = bp["wo"].astype(jnp.bfloat16)
    note_tab = params["note_table"].astype(jnp.bfloat16)
    dur_tab = params["dur_table"].astype(jnp.bfloat16)

    lens3 = lengths.astype(jnp.int32).reshape(B, 1, 1)
    notes3 = notes.astype(jnp.int32).reshape(B, T, 1)
    durs3 = durations.astype(jnp.int32).reshape(B, T, 1)

    def _rep(shape):
        n = len(shape)
        return pl.BlockSpec(shape, lambda i, _n=n: (0,) * _n)

    grid_spec = pltpu.PrefetchScalarGridSpec(
        num_scalar_prefetch=0,
        grid=(B // bblk,),
        in_specs=[
            pl.BlockSpec((bblk, 1, 1), lambda i: (i, 0, 0)),             # lengths
            pl.BlockSpec((bblk, T, 1), lambda i: (i, 0, 0)),             # notes
            pl.BlockSpec((bblk, T, 1), lambda i: (i, 0, 0)),             # durations
            pl.BlockSpec(memory_space=pltpu.MemorySpace.SMEM),           # alpha
            _rep((NOTES, EMB_DIM)),      _rep((DURATIONS, EMB_DIM)),     # tables
            _rep((NUM_BLOCKS, C, 3 * C)), _rep((NUM_BLOCKS, 1, 3 * C)),  # wqkv, bqkv
            _rep((NUM_BLOCKS, C, C)),     _rep((NUM_BLOCKS, 1, C)),      # wo, bo
            _rep((NUM_BLOCKS, 1, C)),     _rep((NUM_BLOCKS, 1, C)),      # ln1 g/b
            _rep((NUM_BLOCKS, KERNEL_SIZE * C, FFN_DIM)),
            _rep((NUM_BLOCKS, 1, FFN_DIM)),                              # w1, b1
            _rep((NUM_BLOCKS, KERNEL_SIZE * FFN_DIM, C)),
            _rep((NUM_BLOCKS, 1, C)),                                    # w2, b2
            _rep((NUM_BLOCKS, 1, C)),     _rep((NUM_BLOCKS, 1, C)),      # ln2 g/b
        ],
        out_specs=pl.BlockSpec((bblk, T, C), lambda i: (i, 0, 0)),
    )

    out_btc = pl.pallas_call(
        melody_encoder_kernel,
        out_shape=jax.ShapeDtypeStruct((B, T, C), jnp.float32),
        grid_spec=grid_spec,
        compiler_params=pltpu.CompilerParams(
            dimension_semantics=("parallel",)),
    )(lens3, notes3, durs3, params["alpha"],
      note_tab, dur_tab,
      wqkv, bp["bqkv"], wo, bp["bo"],
      bp["ln1_g"], bp["ln1_b"],
      w1f, bp["b1"], w2f, bp["b2"],
      bp["ln2_g"], bp["ln2_b"])

    # kernel emits lane-dense [B, T, C]; the NCT permute is cheap XLA glue
    return jnp.transpose(out_btc, (0, 2, 1))        # [B, C, T] — matches PyTorch


# ------------------------------ parameter init -----------------------------------
def init_params(key):
    keys = jax.random.split(key, 1 + NUM_BLOCKS)

    note_table = jax.random.normal(keys[0], (NOTES, EMB_DIM), jnp.float32) * 0.02

    # Duration_Positional_Encoding: fixed sinusoidal table, scaled by learnable alpha.
    pos = jnp.arange(DURATIONS, dtype=jnp.float32)[:, None]
    div = jnp.exp(jnp.arange(0, EMB_DIM, 2, dtype=jnp.float32)
                  * (-math.log(10000.0) / EMB_DIM))
    pe = jnp.zeros((DURATIONS, EMB_DIM), jnp.float32)
    pe = pe.at[:, 0::2].set(jnp.sin(pos * div))
    pe = pe.at[:, 1::2].set(jnp.cos(pos * div))
    alpha = jnp.full((1, 1), 0.01, jnp.float32)

    wqkv, bqkv, wo, bo = [], [], [], []
    ln1_g, ln1_b, ln2_g, ln2_b = [], [], [], []
    w1, b1, w2, b2 = [], [], [], []
    for i in range(NUM_BLOCKS):
        bk = jax.random.split(keys[1 + i], 6)
        s_attn = 1.0 / math.sqrt(ENC_SIZE)
        s_c1 = 1.0 / math.sqrt(ENC_SIZE * KERNEL_SIZE)
        s_c2 = 1.0 / math.sqrt(FFN_DIM * KERNEL_SIZE)
        wq = jax.random.normal(bk[0], (ENC_SIZE, ENC_SIZE), jnp.float32) * s_attn
        wk = jax.random.normal(bk[1], (ENC_SIZE, ENC_SIZE), jnp.float32) * s_attn
        wv = jax.random.normal(bk[2], (ENC_SIZE, ENC_SIZE), jnp.float32) * s_attn
        wqkv.append(jnp.concatenate([wq, wk, wv], axis=1))        # [C, 3C]
        bqkv.append(jnp.zeros((1, 3 * ENC_SIZE), jnp.float32))
        wo.append(jax.random.normal(bk[3], (ENC_SIZE, ENC_SIZE), jnp.float32) * s_attn)
        bo.append(jnp.zeros((1, ENC_SIZE), jnp.float32))
        ln1_g.append(jnp.ones((1, ENC_SIZE), jnp.float32))
        ln1_b.append(jnp.zeros((1, ENC_SIZE), jnp.float32))
        w1.append(jax.random.normal(bk[4], (KERNEL_SIZE, ENC_SIZE, FFN_DIM),
                                    jnp.float32) * s_c1)
        b1.append(jnp.zeros((1, FFN_DIM), jnp.float32))
        w2.append(jax.random.normal(bk[5], (KERNEL_SIZE, FFN_DIM, ENC_SIZE),
                                    jnp.float32) * s_c2)
        b2.append(jnp.zeros((1, ENC_SIZE), jnp.float32))
        ln2_g.append(jnp.ones((1, ENC_SIZE), jnp.float32))
        ln2_b.append(jnp.zeros((1, ENC_SIZE), jnp.float32))

    blocks = dict(
        wqkv=jnp.stack(wqkv), bqkv=jnp.stack(bqkv),
        wo=jnp.stack(wo), bo=jnp.stack(bo),
        ln1_g=jnp.stack(ln1_g), ln1_b=jnp.stack(ln1_b),
        w1=jnp.stack(w1), b1=jnp.stack(b1),
        w2=jnp.stack(w2), b2=jnp.stack(b2),
        ln2_g=jnp.stack(ln2_g), ln2_b=jnp.stack(ln2_b),
    )
    return dict(note_table=note_table, dur_table=pe, alpha=alpha, blocks=blocks)


# ------------------------------------ main ----------------------------------------
if __name__ == "__main__":
    key = jax.random.PRNGKey(0)
    pkey, nkey, dkey = jax.random.split(key, 3)

    B, T = 2, 8
    notes = jax.random.randint(nkey, (B, T), 0, NOTES, dtype=jnp.int32)
    durations = jax.random.randint(dkey, (B, T), 0, DURATIONS, dtype=jnp.int32)
    lengths = jnp.array([8, 5], dtype=jnp.int32)

    params = init_params(pkey)
    out = melody_encoder_forward(notes, durations, lengths, params)
    out = jax.block_until_ready(out)

    assert out.shape == (B, ENC_SIZE, T), out.shape
    assert bool(jnp.all(jnp.isfinite(out)))
    # padded positions (t >= length) must be zeroed by the mask
    assert bool(jnp.all(out[1, :, 5:] == 0.0))
    print("KERNEL_OK")
</pallas_src>

<mosaic_0001>
module attributes {stable_mosaic.version = 11 : i64} {
  func.func @melody_encoder_kernel(%arg0: i32, %arg1: memref<2x1x1xi32, #tpu.memory_space<vmem>>, %arg2: memref<2x8x1xi32, #tpu.memory_space<vmem>>, %arg3: memref<2x8x1xi32, #tpu.memory_space<vmem>>, %arg4: memref<1x1xf32, #tpu.memory_space<smem>>, %arg5: memref<16x16xbf16, #tpu.memory_space<vmem>>, %arg6: memref<32x16xbf16, #tpu.memory_space<vmem>>, %arg7: memref<2x32x96xbf16, #tpu.memory_space<vmem>>, %arg8: memref<2x1x96xf32, #tpu.memory_space<vmem>>, %arg9: memref<2x32x32xbf16, #tpu.memory_space<vmem>>, %arg10: memref<2x1x32xf32, #tpu.memory_space<vmem>>, %arg11: memref<2x1x32xf32, #tpu.memory_space<vmem>>, %arg12: memref<2x1x32xf32, #tpu.memory_space<vmem>>, %arg13: memref<2x96x128xbf16, #tpu.memory_space<vmem>>, %arg14: memref<2x1x128xf32, #tpu.memory_space<vmem>>, %arg15: memref<2x384x32xbf16, #tpu.memory_space<vmem>>, %arg16: memref<2x1x32xf32, #tpu.memory_space<vmem>>, %arg17: memref<2x1x32xf32, #tpu.memory_space<vmem>>, %arg18: memref<2x1x32xf32, #tpu.memory_space<vmem>>, %arg19: memref<2x8x32xf32, #tpu.memory_space<vmem>>) attributes {dimension_semantics = [#tpu.dimension_semantics<parallel>], iteration_bounds = array<i64: 1>, scalar_prefetch = 0 : i64, scratch_operands = 0 : i64, tpu.core_type = #tpu.core_type<tc>, window_params = [{transform_indices = @transform_0, window_bounds = array<i64: 2, 1, 1>}, {transform_indices = @transform_1, window_bounds = array<i64: 2, 8, 1>}, {transform_indices = @transform_2, window_bounds = array<i64: 2, 8, 1>}, {transform_indices = @transform_3, window_bounds = array<i64: 1, 1>}, {pipeline_mode = #tpu.pipeline_mode<synchronous>, transform_indices = @transform_4, window_bounds = array<i64: 16, 16>}, {pipeline_mode = #tpu.pipeline_mode<synchronous>, transform_indices = @transform_5, window_bounds = array<i64: 32, 16>}, {pipeline_mode = #tpu.pipeline_mode<synchronous>, transform_indices = @transform_6, window_bounds = array<i64: 2, 32, 96>}, {pipeline_mode = #tpu.pipeline_mode<synchronous>, transform_indices = @transform_7, window_bounds = array<i64: 2, 1, 96>}, {pipeline_mode = #tpu.pipeline_mode<synchronous>, transform_indices = @transform_8, window_bounds = array<i64: 2, 32, 32>}, {pipeline_mode = #tpu.pipeline_mode<synchronous>, transform_indices = @transform_9, window_bounds = array<i64: 2, 1, 32>}, {pipeline_mode = #tpu.pipeline_mode<synchronous>, transform_indices = @transform_10, window_bounds = array<i64: 2, 1, 32>}, {pipeline_mode = #tpu.pipeline_mode<synchronous>, transform_indices = @transform_11, window_bounds = array<i64: 2, 1, 32>}, {pipeline_mode = #tpu.pipeline_mode<synchronous>, transform_indices = @transform_12, window_bounds = array<i64: 2, 96, 128>}, {pipeline_mode = #tpu.pipeline_mode<synchronous>, transform_indices = @transform_13, window_bounds = array<i64: 2, 1, 128>}, {pipeline_mode = #tpu.pipeline_mode<synchronous>, transform_indices = @transform_14, window_bounds = array<i64: 2, 384, 32>}, {pipeline_mode = #tpu.pipeline_mode<synchronous>, transform_indices = @transform_15, window_bounds = array<i64: 2, 1, 32>}, {pipeline_mode = #tpu.pipeline_mode<synchronous>, transform_indices = @transform_16, window_bounds = array<i64: 2, 1, 32>}, {pipeline_mode = #tpu.pipeline_mode<synchronous>, transform_indices = @transform_17, window_bounds = array<i64: 2, 1, 32>}, {transform_indices = @transform_18, window_bounds = array<i64: 2, 8, 32>}]} {
    %c0 = arith.constant 0 : index
    %c0_0 = arith.constant 0 : index
    %c0_1 = arith.constant 0 : index
    %0 = vector.load %arg1[%c0, %c0_0, %c0_1] : memref<2x1x1xi32, #tpu.memory_space<vmem>>, vector<2x1x1xi32>
    %1 = tpu.iota {dimensions = array<i32: 1>} : vector<2x8x1xi32>
    %2 = vector.broadcast %0 : vector<2x1x1xi32> to vector<2x8x1xi32>
    %3 = arith.cmpi slt, %1, %2 : vector<2x8x1xi32>
    %4 = arith.extui %3 : vector<2x8x1xi1> to vector<2x8x1xi32>
    %5 = arith.sitofp %4 : vector<2x8x1xi32> to vector<2x8x1xf32>
    %6 = vector.shape_cast %5 : vector<2x8x1xf32> to vector<16x1xf32>
    %7 = tpu.iota {dimensions = array<i32: 0>} : vector<2x8x1xi32>
    %8 = vector.shape_cast %7 : vector<2x8x1xi32> to vector<16x1xi32>
    %9 = tpu.iota {dimensions = array<i32: 2>} : vector<1x2x8xi32>
    %10 = vector.shape_cast %0 : vector<2x1x1xi32> to vector<1x2x1xi32>
    %11 = vector.broadcast %10 : vector<1x2x1xi32> to vector<1x2x8xi32>
    %12 = arith.cmpi slt, %9, %11 : vector<1x2x8xi32>
    %13 = arith.extui %12 : vector<1x2x8xi1> to vector<1x2x8xi32>
    %14 = vector.shape_cast %13 : vector<1x2x8xi32> to vector<1x16xi32>
    %15 = tpu.iota {dimensions = array<i32: 1>} : vector<1x2x8xi32>
    %16 = vector.shape_cast %15 : vector<1x2x8xi32> to vector<1x16xi32>
    %17 = vector.broadcast %8 : vector<16x1xi32> to vector<16x16xi32>
    %18 = vector.broadcast %16 : vector<1x16xi32> to vector<16x16xi32>
    %19 = arith.cmpi eq, %17, %18 : vector<16x16xi32>
    %c0_i32 = arith.constant 0 : i32
    %20 = vector.broadcast %c0_i32 : i32 to vector<1x16xi32>
    %21 = arith.cmpi sgt, %14, %20 : vector<1x16xi32>
    %22 = vector.broadcast %21 : vector<1x16xi1> to vector<16x16xi1>
    %23 = arith.andi %19, %22 : vector<16x16xi1>
    %cst = arith.constant 0.000000e+00 : f32
    %cst_2 = arith.constant -1.000000e+09 : f32
    %24 = vector.broadcast %cst : f32 to vector<16x16xf32>
    %25 = vector.broadcast %cst_2 : f32 to vector<16x16xf32>
    %26 = arith.select %23, %24, %25 : vector<16x16xi1>, vector<16x16xf32>
    %27 = vector.shape_cast %1 : vector<2x8x1xi32> to vector<16x1xi32>
    %c-1_i32 = arith.constant -1 : i32
    %28 = vector.broadcast %c-1_i32 : i32 to vector<16x1xi32>
    %29 = arith.addi %27, %28 : vector<16x1xi32>
    %c0_i32_3 = arith.constant 0 : i32
    %30 = vector.broadcast %c0_i32_3 : i32 to vector<16x1xi32>
    %31 = arith.cmpi sge, %29, %30 : vector<16x1xi32>
    %c7_i32 = arith.constant 7 : i32
    %32 = vector.broadcast %c7_i32 : i32 to vector<16x1xi32>
    %33 = arith.cmpi sle, %29, %32 : vector<16x1xi32>
    %34 = arith.andi %31, %33 : vector<16x1xi1>
    %35 = arith.extui %34 : vector<16x1xi1> to vector<16x1xi32>
    %36 = arith.sitofp %35 : vector<16x1xi32> to vector<16x1xf32>
    %c0_i32_4 = arith.constant 0 : i32
    %37 = vector.broadcast %c0_i32_4 : i32 to vector<16x1xi32>
    %38 = arith.addi %27, %37 : vector<16x1xi32>
    %c0_i32_5 = arith.constant 0 : i32
    %39 = vector.broadcast %c0_i32_5 : i32 to vector<16x1xi32>
    %40 = arith.cmpi sge, %38, %39 : vector<16x1xi32>
    %c7_i32_6 = arith.constant 7 : i32
    %41 = vector.broadcast %c7_i32_6 : i32 to vector<16x1xi32>
    %42 = arith.cmpi sle, %38, %41 : vector<16x1xi32>
    %43 = arith.andi %40, %42 : vector<16x1xi1>
    %44 = arith.extui %43 : vector<16x1xi1> to vector<16x1xi32>
    %45 = arith.sitofp %44 : vector<16x1xi32> to vector<16x1xf32>
    %c1_i32 = arith.constant 1 : i32
    %46 = vector.broadcast %c1_i32 : i32 to vector<16x1xi32>
    %47 = arith.addi %27, %46 : vector<16x1xi32>
    %c0_i32_7 = arith.constant 0 : i32
    %48 = vector.broadcast %c0_i32_7 : i32 to vector<16x1xi32>
    %49 = arith.cmpi sge, %47, %48 : vector<16x1xi32>
    %c7_i32_8 = arith.constant 7 : i32
    %50 = vector.broadcast %c7_i32_8 : i32 to vector<16x1xi32>
    %51 = arith.cmpi sle, %47, %50 : vector<16x1xi32>
    %52 = arith.andi %49, %51 : vector<16x1xi1>
    %53 = arith.extui %52 : vector<16x1xi1> to vector<16x1xi32>
    %54 = arith.sitofp %53 : vector<16x1xi32> to vector<16x1xf32>
    %c0_9 = arith.constant 0 : index
    %c0_10 = arith.constant 0 : index
    %c0_11 = arith.constant 0 : index
    %55 = vector.load %arg2[%c0_9, %c0_10, %c0_11] : memref<2x8x1xi32, #tpu.memory_space<vmem>>, vector<2x8x1xi32>
    %56 = vector.shape_cast %55 : vector<2x8x1xi32> to vector<16x1xi32>
    %57 = tpu.iota {dimensions = array<i32: 1>} : vector<1x16xi32>
    %58 = vector.broadcast %56 : vector<16x1xi32> to vector<16x16xi32>
    %59 = vector.broadcast %57 : vector<1x16xi32> to vector<16x16xi32>
    %60 = arith.cmpi eq, %58, %59 : vector<16x16xi32>
    %61 = arith.extui %60 : vector<16x16xi1> to vector<16x16xi32>
    %62 = arith.sitofp %61 : vector<16x16xi32> to vector<16x16xf32>
    %63 = arith.truncf %62 : vector<16x16xf32> to vector<16x16xbf16>
    %c0_12 = arith.constant 0 : index
    %c0_13 = arith.constant 0 : index
    %c0_14 = arith.constant 0 : index
    %64 = vector.load %arg3[%c0_12, %c0_13, %c0_14] : memref<2x8x1xi32, #tpu.memory_space<vmem>>, vector<2x8x1xi32>
    %65 = vector.shape_cast %64 : vector<2x8x1xi32> to vector<16x1xi32>
    %66 = tpu.iota {dimensions = array<i32: 1>} : vector<1x32xi32>
    %67 = vector.broadcast %65 : vector<16x1xi32> to vector<16x32xi32>
    %68 = vector.broadcast %66 : vector<1x32xi32> to vector<16x32xi32>
    %69 = arith.cmpi eq, %67, %68 : vector<16x32xi32>
    %70 = arith.extui %69 : vector<16x32xi1> to vector<16x32xi32>
    %71 = arith.sitofp %70 : vector<16x32xi32> to vector<16x32xf32>
    %72 = arith.truncf %71 : vector<16x32xf32> to vector<16x32xbf16>
    %c0_15 = arith.constant 0 : index
    %c0_16 = arith.constant 0 : index
    %73 = vector.load %arg5[%c0_15, %c0_16] : memref<16x16xbf16, #tpu.memory_space<vmem>>, vector<16x16xbf16>
    %cst_17 = arith.constant dense<0.000000e+00> : vector<16x16xf32>
    %74 = tpu.matmul %63, %73, %cst_17 {dimension_numbers = #tpu.dot_dimension_numbers<[1], [0], [0], [1], [0, 0, 1, 1], [], []>} : vector<16x16xbf16>, vector<16x16xbf16>, vector<16x16xf32> -> vector<16x16xf32>
    %c0_18 = arith.constant 0 : index
    %c0_19 = arith.constant 0 : index
    %75 = vector.load %arg6[%c0_18, %c0_19] : memref<32x16xbf16, #tpu.memory_space<vmem>>, vector<32x16xbf16>
    %cst_20 = arith.constant dense<0.000000e+00> : vector<16x16xf32>
    %76 = tpu.matmul %72, %75, %cst_20 {dimension_numbers = #tpu.dot_dimension_numbers<[1], [0], [0], [1], [0, 0, 1, 1], [], []>} : vector<16x32xbf16>, vector<32x16xbf16>, vector<16x16xf32> -> vector<16x16xf32>
    %c0_21 = arith.constant 0 : index
    %c0_22 = arith.constant 0 : index
    %77 = memref.load %arg4[%c0_21, %c0_22] : memref<1x1xf32, #tpu.memory_space<smem>>
    %78 = vector.broadcast %77 : f32 to vector<16x16xf32>
    %79 = arith.mulf %78, %76 : vector<16x16xf32>
    %80 = tpu.concatenate %74, %79 in 1 : vector<16x16xf32>, vector<16x16xf32> -> vector<16x32xf32>
    %81 = vector.broadcast %6 : vector<16x1xf32> to vector<16x32xf32>
    %82 = arith.mulf %80, %81 : vector<16x32xf32>
    %83 = arith.truncf %82 : vector<16x32xf32> to vector<16x32xbf16>
    %c0_23 = arith.constant 0 : index
    %c0_24 = arith.constant 0 : index
    %c0_25 = arith.constant 0 : index
    %84 = vector.load %arg7[%c0_23, %c0_24, %c0_25] : memref<2x32x96xbf16, #tpu.memory_space<vmem>>, vector<1x32x96xbf16>
    %85 = vector.shape_cast %84 : vector<1x32x96xbf16> to vector<32x96xbf16>
    %cst_26 = arith.constant dense<0.000000e+00> : vector<16x96xf32>
    %86 = tpu.matmul %83, %85, %cst_26 {dimension_numbers = #tpu.dot_dimension_numbers<[1], [0], [0], [1], [0, 0, 1, 1], [], []>} : vector<16x32xbf16>, vector<32x96xbf16>, vector<16x96xf32> -> vector<16x96xf32>
    %c0_27 = arith.constant 0 : index
    %c0_28 = arith.constant 0 : index
    %c0_29 = arith.constant 0 : index
    %87 = vector.load %arg8[%c0_27, %c0_28, %c0_29] : memref<2x1x96xf32, #tpu.memory_space<vmem>>, vector<1x1x96xf32>
    %88 = vector.shape_cast %87 : vector<1x1x96xf32> to vector<1x96xf32>
    %89 = vector.broadcast %88 : vector<1x96xf32> to vector<16x96xf32>
    %90 = arith.addf %86, %89 : vector<16x96xf32>
    %c0_30 = arith.constant 0 : index
    %c0_31 = arith.constant 0 : index
    %c0_32 = arith.constant 0 : index
    %91 = vector.load %arg9[%c0_30, %c0_31, %c0_32] : memref<2x32x32xbf16, #tpu.memory_space<vmem>>, vector<1x32x32xbf16>
    %92 = vector.shape_cast %91 : vector<1x32x32xbf16> to vector<32x32xbf16>
    %93 = vector.extract_strided_slice %90 {offsets = [0, 0], sizes = [16, 16], strides = [1, 1]} : vector<16x96xf32> to vector<16x16xf32>
    %94 = arith.truncf %93 : vector<16x16xf32> to vector<16x16xbf16>
    %95 = vector.extract_strided_slice %90 {offsets = [0, 32], sizes = [16, 16], strides = [1, 1]} : vector<16x96xf32> to vector<16x16xf32>
    %96 = arith.truncf %95 : vector<16x16xf32> to vector<16x16xbf16>
    %97 = vector.extract_strided_slice %90 {offsets = [0, 64], sizes = [16, 16], strides = [1, 1]} : vector<16x96xf32> to vector<16x16xf32>
    %98 = arith.truncf %97 : vector<16x16xf32> to vector<16x16xbf16>
    %cst_33 = arith.constant dense<0.000000e+00> : vector<16x16xf32>
    %99 = tpu.matmul %94, %96, %cst_33 {dimension_numbers = #tpu.dot_dimension_numbers<[1], [1], [0], [0], [0, 0, 1, 0], [], []>} : vector<16x16xbf16>, vector<16x16xbf16>, vector<16x16xf32> -> vector<16x16xf32>
    %cst_34 = arith.constant 2.500000e-01 : f32
    %100 = vector.broadcast %cst_34 : f32 to vector<16x16xf32>
    %101 = arith.mulf %99, %100 : vector<16x16xf32>
    %102 = arith.addf %101, %26 : vector<16x16xf32>
    %cst_35 = arith.constant dense<0xFF800000> : vector<16xf32>
    %103 = vector.multi_reduction <maximumf>, %102, %cst_35 [1] : vector<16x16xf32> to vector<16xf32>
    %104 = vector.shape_cast %103 : vector<16xf32> to vector<16x1xf32>
    %105 = vector.broadcast %104 : vector<16x1xf32> to vector<16x16xf32>
    %106 = arith.subf %102, %105 : vector<16x16xf32>
    %107 = math.exp %106 : vector<16x16xf32>
    %cst_36 = arith.constant dense<0.000000e+00> : vector<16xf32>
    %108 = vector.multi_reduction <add>, %107, %cst_36 [1] : vector<16x16xf32> to vector<16xf32>
    %109 = vector.shape_cast %108 : vector<16xf32> to vector<16x1xf32>
    %110 = tpu.reciprocal %109 {approx = true} : vector<16x1xf32> -> vector<16x1xf32>
    %111 = vector.broadcast %110 : vector<16x1xf32> to vector<16x16xf32>
    %112 = arith.mulf %107, %111 : vector<16x16xf32>
    %113 = arith.truncf %112 : vector<16x16xf32> to vector<16x16xbf16>
    %cst_37 = arith.constant dense<0.000000e+00> : vector<16x16xf32>
    %114 = tpu.matmul %113, %98, %cst_37 {dimension_numbers = #tpu.dot_dimension_numbers<[1], [0], [0], [1], [0, 0, 1, 1], [], []>} : vector<16x16xbf16>, vector<16x16xbf16>, vector<16x16xf32> -> vector<16x16xf32>
    %115 = arith.truncf %114 : vector<16x16xf32> to vector<16x16xbf16>
    %116 = vector.extract_strided_slice %92 {offsets = [0, 0], sizes = [16, 32], strides = [1, 1]} : vector<32x32xbf16> to vector<16x32xbf16>
    %cst_38 = arith.constant dense<0.000000e+00> : vector<16x32xf32>
    %117 = tpu.matmul %115, %116, %cst_38 {dimension_numbers = #tpu.dot_dimension_numbers<[1], [0], [0], [1], [0, 0, 1, 1], [], []>} : vector<16x16xbf16>, vector<16x32xbf16>, vector<16x32xf32> -> vector<16x32xf32>
    %118 = vector.extract_strided_slice %90 {offsets = [0, 16], sizes = [16, 16], strides = [1, 1]} : vector<16x96xf32> to vector<16x16xf32>
    %119 = arith.truncf %118 : vector<16x16xf32> to vector<16x16xbf16>
    %120 = vector.extract_strided_slice %90 {offsets = [0, 48], sizes = [16, 16], strides = [1, 1]} : vector<16x96xf32> to vector<16x16xf32>
    %121 = arith.truncf %120 : vector<16x16xf32> to vector<16x16xbf16>
    %122 = vector.extract_strided_slice %90 {offsets = [0, 80], sizes = [16, 16], strides = [1, 1]} : vector<16x96xf32> to vector<16x16xf32>
    %123 = arith.truncf %122 : vector<16x16xf32> to vector<16x16xbf16>
    %cst_39 = arith.constant dense<0.000000e+00> : vector<16x16xf32>
    %124 = tpu.matmul %119, %121, %cst_39 {dimension_numbers = #tpu.dot_dimension_numbers<[1], [1], [0], [0], [0, 0, 1, 0], [], []>} : vector<16x16xbf16>, vector<16x16xbf16>, vector<16x16xf32> -> vector<16x16xf32>
    %cst_40 = arith.constant 2.500000e-01 : f32
    %125 = vector.broadcast %cst_40 : f32 to vector<16x16xf32>
    %126 = arith.mulf %124, %125 : vector<16x16xf32>
    %127 = arith.addf %126, %26 : vector<16x16xf32>
    %cst_41 = arith.constant dense<0xFF800000> : vector<16xf32>
    %128 = vector.multi_reduction <maximumf>, %127, %cst_41 [1] : vector<16x16xf32> to vector<16xf32>
    %129 = vector.shape_cast %128 : vector<16xf32> to vector<16x1xf32>
    %130 = vector.broadcast %129 : vector<16x1xf32> to vector<16x16xf32>
    %131 = arith.subf %127, %130 : vector<16x16xf32>
    %132 = math.exp %131 : vector<16x16xf32>
    %cst_42 = arith.constant dense<0.000000e+00> : vector<16xf32>
    %133 = vector.multi_reduction <add>, %132, %cst_42 [1] : vector<16x16xf32> to vector<16xf32>
    %134 = vector.shape_cast %133 : vector<16xf32> to vector<16x1xf32>
    %135 = tpu.reciprocal %134 {approx = true} : vector<16x1xf32> -> vector<16x1xf32>
    %136 = vector.broadcast %135 : vector<16x1xf32> to vector<16x16xf32>
    %137 = arith.mulf %132, %136 : vector<16x16xf32>
    %138 = arith.truncf %137 : vector<16x16xf32> to vector<16x16xbf16>
    %cst_43 = arith.constant dense<0.000000e+00> : vector<16x16xf32>
    %139 = tpu.matmul %138, %123, %cst_43 {dimension_numbers = #tpu.dot_dimension_numbers<[1], [0], [0], [1], [0, 0, 1, 1], [], []>} : vector<16x16xbf16>, vector<16x16xbf16>, vector<16x16xf32> -> vector<16x16xf32>
    %140 = arith.truncf %139 : vector<16x16xf32> to vector<16x16xbf16>
    %141 = vector.extract_strided_slice %92 {offsets = [16, 0], sizes = [16, 32], strides = [1, 1]} : vector<32x32xbf16> to vector<16x32xbf16>
    %cst_44 = arith.constant dense<0.000000e+00> : vector<16x32xf32>
    %142 = tpu.matmul %140, %141, %cst_44 {dimension_numbers = #tpu.dot_dimension_numbers<[1], [0], [0], [1], [0, 0, 1, 1], [], []>} : vector<16x16xbf16>, vector<16x32xbf16>, vector<16x32xf32> -> vector<16x32xf32>
    %143 = arith.addf %117, %142 : vector<16x32xf32>
    %c0_45 = arith.constant 0 : index
    %c0_46 = arith.constant 0 : index
    %c0_47 = arith.constant 0 : index
    %144 = vector.load %arg10[%c0_45, %c0_46, %c0_47] : memref<2x1x32xf32, #tpu.memory_space<vmem>>, vector<1x1x32xf32>
    %145 = vector.shape_cast %144 : vector<1x1x32xf32> to vector<1x32xf32>
    %146 = vector.broadcast %145 : vector<1x32xf32> to vector<16x32xf32>
    %147 = arith.addf %143, %146 : vector<16x32xf32>
    %148 = arith.addf %82, %147 : vector<16x32xf32>
    %c0_48 = arith.constant 0 : index
    %c0_49 = arith.constant 0 : index
    %c0_50 = arith.constant 0 : index
    %149 = vector.load %arg11[%c0_48, %c0_49, %c0_50] : memref<2x1x32xf32, #tpu.memory_space<vmem>>, vector<1x1x32xf32>
    %150 = vector.shape_cast %149 : vector<1x1x32xf32> to vector<1x32xf32>
    %c0_51 = arith.constant 0 : index
    %c0_52 = arith.constant 0 : index
    %c0_53 = arith.constant 0 : index
    %151 = vector.load %arg12[%c0_51, %c0_52, %c0_53] : memref<2x1x32xf32, #tpu.memory_space<vmem>>, vector<1x1x32xf32>
    %152 = vector.shape_cast %151 : vector<1x1x32xf32> to vector<1x32xf32>
    %cst_54 = arith.constant dense<0.000000e+00> : vector<16xf32>
    %153 = vector.multi_reduction <add>, %148, %cst_54 [1] : vector<16x32xf32> to vector<16xf32>
    %154 = vector.shape_cast %153 : vector<16xf32> to vector<16x1xf32>
    %cst_55 = arith.constant 3.200000e+01 : f32
    %155 = vector.broadcast %cst_55 : f32 to vector<16x1xf32>
    %156 = arith.divf %154, %155 : vector<16x1xf32>
    %157 = vector.broadcast %156 : vector<16x1xf32> to vector<16x32xf32>
    %158 = arith.subf %148, %157 : vector<16x32xf32>
    %159 = arith.mulf %158, %158 : vector<16x32xf32>
    %cst_56 = arith.constant dense<0.000000e+00> : vector<16xf32>
    %160 = vector.multi_reduction <add>, %159, %cst_56 [1] : vector<16x32xf32> to vector<16xf32>
    %161 = vector.shape_cast %160 : vector<16xf32> to vector<16x1xf32>
    %cst_57 = arith.constant 3.200000e+01 : f32
    %162 = vector.broadcast %cst_57 : f32 to vector<16x1xf32>
    %163 = arith.divf %161, %162 : vector<16x1xf32>
    %164 = vector.broadcast %156 : vector<16x1xf32> to vector<16x32xf32>
    %165 = arith.subf %148, %164 : vector<16x32xf32>
    %cst_58 = arith.constant 9.99999974E-6 : f32
    %166 = vector.broadcast %cst_58 : f32 to vector<16x1xf32>
    %167 = arith.addf %163, %166 : vector<16x1xf32>
    %168 = math.rsqrt %167 : vector<16x1xf32>
    %169 = vector.broadcast %168 : vector<16x1xf32> to vector<16x32xf32>
    %170 = arith.mulf %165, %169 : vector<16x32xf32>
    %171 = vector.broadcast %150 : vector<1x32xf32> to vector<16x32xf32>
    %172 = arith.mulf %170, %171 : vector<16x32xf32>
    %173 = vector.broadcast %152 : vector<1x32xf32> to vector<16x32xf32>
    %174 = arith.addf %172, %173 : vector<16x32xf32>
    %175 = vector.broadcast %6 : vector<16x1xf32> to vector<16x32xf32>
    %176 = arith.mulf %174, %175 : vector<16x32xf32>
    %c0_59 = arith.constant 0 : index
    %c0_60 = arith.constant 0 : index
    %c0_61 = arith.constant 0 : index
    %177 = vector.load %arg13[%c0_59, %c0_60, %c0_61] : memref<2x96x128xbf16, #tpu.memory_space<vmem>>, vector<1x96x128xbf16>
    %178 = vector.shape_cast %177 : vector<1x96x128xbf16> to vector<96x128xbf16>
    %c0_62 = arith.constant 0 : index
    %c0_63 = arith.constant 0 : index
    %c0_64 = arith.constant 0 : index
    %179 = vector.load %arg14[%c0_62, %c0_63, %c0_64] : memref<2x1x128xf32, #tpu.memory_space<vmem>>, vector<1x1x128xf32>
    %180 = vector.shape_cast %179 : vector<1x1x128xf32> to vector<1x128xf32>
    %cst_65 = arith.constant 0.000000e+00 : f32
    %181 = vector.broadcast %cst_65 : f32 to vector<1x32xf32>
    %182 = vector.extract_strided_slice %176 {offsets = [0, 0], sizes = [15, 32], strides = [1, 1]} : vector<16x32xf32> to vector<15x32xf32>
    %183 = tpu.concatenate %181, %182 in 0 : vector<1x32xf32>, vector<15x32xf32> -> vector<16x32xf32>
    %184 = vector.broadcast %36 : vector<16x1xf32> to vector<16x32xf32>
    %185 = arith.mulf %183, %184 : vector<16x32xf32>
    %186 = vector.broadcast %45 : vector<16x1xf32> to vector<16x32xf32>
    %187 = arith.mulf %176, %186 : vector<16x32xf32>
    %cst_66 = arith.constant 0.000000e+00 : f32
    %188 = vector.broadcast %cst_66 : f32 to vector<1x32xf32>
    %189 = vector.extract_strided_slice %176 {offsets = [1, 0], sizes = [15, 32], strides = [1, 1]} : vector<16x32xf32> to vector<15x32xf32>
    %190 = tpu.concatenate %189, %188 in 0 : vector<15x32xf32>, vector<1x32xf32> -> vector<16x32xf32>
    %191 = vector.broadcast %54 : vector<16x1xf32> to vector<16x32xf32>
    %192 = arith.mulf %190, %191 : vector<16x32xf32>
    %193 = tpu.concatenate %185, %187, %192 in 1 : vector<16x32xf32>, vector<16x32xf32>, vector<16x32xf32> -> vector<16x96xf32>
    %194 = arith.truncf %193 : vector<16x96xf32> to vector<16x96xbf16>
    %cst_67 = arith.constant dense<0.000000e+00> : vector<16x128xf32>
    %195 = tpu.matmul %194, %178, %cst_67 {dimension_numbers = #tpu.dot_dimension_numbers<[1], [0], [0], [1], [0, 0, 1, 1], [], []>} : vector<16x96xbf16>, vector<96x128xbf16>, vector<16x128xf32> -> vector<16x128xf32>
    %196 = vector.broadcast %180 : vector<1x128xf32> to vector<16x128xf32>
    %197 = arith.addf %195, %196 : vector<16x128xf32>
    %cst_68 = arith.constant 0.000000e+00 : f32
    %198 = vector.broadcast %cst_68 : f32 to vector<16x128xf32>
    %199 = arith.maximumf %197, %198 : vector<16x128xf32>
    %c0_69 = arith.constant 0 : index
    %c0_70 = arith.constant 0 : index
    %c0_71 = arith.constant 0 : index
    %200 = vector.load %arg15[%c0_69, %c0_70, %c0_71] : memref<2x384x32xbf16, #tpu.memory_space<vmem>>, vector<1x384x32xbf16>
    %201 = vector.shape_cast %200 : vector<1x384x32xbf16> to vector<384x32xbf16>
    %c0_72 = arith.constant 0 : index
    %c0_73 = arith.constant 0 : index
    %c0_74 = arith.constant 0 : index
    %202 = vector.load %arg16[%c0_72, %c0_73, %c0_74] : memref<2x1x32xf32, #tpu.memory_space<vmem>>, vector<1x1x32xf32>
    %203 = vector.shape_cast %202 : vector<1x1x32xf32> to vector<1x32xf32>
    %cst_75 = arith.constant 0.000000e+00 : f32
    %204 = vector.broadcast %cst_75 : f32 to vector<1x128xf32>
    %205 = vector.extract_strided_slice %199 {offsets = [0, 0], sizes = [15, 128], strides = [1, 1]} : vector<16x128xf32> to vector<15x128xf32>
    %206 = tpu.concatenate %204, %205 in 0 : vector<1x128xf32>, vector<15x128xf32> -> vector<16x128xf32>
    %207 = vector.broadcast %36 : vector<16x1xf32> to vector<16x128xf32>
    %208 = arith.mulf %206, %207 : vector<16x128xf32>
    %209 = vector.broadcast %45 : vector<16x1xf32> to vector<16x128xf32>
    %210 = arith.mulf %199, %209 : vector<16x128xf32>
    %cst_76 = arith.constant 0.000000e+00 : f32
    %211 = vector.broadcast %cst_76 : f32 to vector<1x128xf32>
    %212 = vector.extract_strided_slice %199 {offsets = [1, 0], sizes = [15, 128], strides = [1, 1]} : vector<16x128xf32> to vector<15x128xf32>
    %213 = tpu.concatenate %212, %211 in 0 : vector<15x128xf32>, vector<1x128xf32> -> vector<16x128xf32>
    %214 = vector.broadcast %54 : vector<16x1xf32> to vector<16x128xf32>
    %215 = arith.mulf %213, %214 : vector<16x128xf32>
    %216 = tpu.concatenate %208, %210, %215 in 1 : vector<16x128xf32>, vector<16x128xf32>, vector<16x128xf32> -> vector<16x384xf32>
    %217 = arith.truncf %216 : vector<16x384xf32> to vector<16x384xbf16>
    %cst_77 = arith.constant dense<0.000000e+00> : vector<16x32xf32>
    %218 = tpu.matmul %217, %201, %cst_77 {dimension_numbers = #tpu.dot_dimension_numbers<[1], [0], [0], [1], [0, 0, 1, 1], [], []>} : vector<16x384xbf16>, vector<384x32xbf16>, vector<16x32xf32> -> vector<16x32xf32>
    %219 = vector.broadcast %203 : vector<1x32xf32> to vector<16x32xf32>
    %220 = arith.addf %218, %219 : vector<16x32xf32>
    %221 = arith.addf %176, %220 : vector<16x32xf32>
    %c0_78 = arith.constant 0 : index
    %c0_79 = arith.constant 0 : index
    %c0_80 = arith.constant 0 : index
    %222 = vector.load %arg17[%c0_78, %c0_79, %c0_80] : memref<2x1x32xf32, #tpu.memory_space<vmem>>, vector<1x1x32xf32>
    %223 = vector.shape_cast %222 : vector<1x1x32xf32> to vector<1x32xf32>
    %c0_81 = arith.constant 0 : index
    %c0_82 = arith.constant 0 : index
    %c0_83 = arith.constant 0 : index
    %224 = vector.load %arg18[%c0_81, %c0_82, %c0_83] : memref<2x1x32xf32, #tpu.memory_space<vmem>>, vector<1x1x32xf32>
    %225 = vector.shape_cast %224 : vector<1x1x32xf32> to vector<1x32xf32>
    %cst_84 = arith.constant dense<0.000000e+00> : vector<16xf32>
    %226 = vector.multi_reduction <add>, %221, %cst_84 [1] : vector<16x32xf32> to vector<16xf32>
    %227 = vector.shape_cast %226 : vector<16xf32> to vector<16x1xf32>
    %cst_85 = arith.constant 3.200000e+01 : f32
    %228 = vector.broadcast %cst_85 : f32 to vector<16x1xf32>
    %229 = arith.divf %227, %228 : vector<16x1xf32>
    %230 = vector.broadcast %229 : vector<16x1xf32> to vector<16x32xf32>
    %231 = arith.subf %221, %230 : vector<16x32xf32>
    %232 = arith.mulf %231, %231 : vector<16x32xf32>
    %cst_86 = arith.constant dense<0.000000e+00> : vector<16xf32>
    %233 = vector.multi_reduction <add>, %232, %cst_86 [1] : vector<16x32xf32> to vector<16xf32>
    %234 = vector.shape_cast %233 : vector<16xf32> to vector<16x1xf32>
    %cst_87 = arith.constant 3.200000e+01 : f32
    %235 = vector.broadcast %cst_87 : f32 to vector<16x1xf32>
    %236 = arith.divf %234, %235 : vector<16x1xf32>
    %237 = vector.broadcast %229 : vector<16x1xf32> to vector<16x32xf32>
    %238 = arith.subf %221, %237 : vector<16x32xf32>
    %cst_88 = arith.constant 9.99999974E-6 : f32
    %239 = vector.broadcast %cst_88 : f32 to vector<16x1xf32>
    %240 = arith.addf %236, %239 : vector<16x1xf32>
    %241 = math.rsqrt %240 : vector<16x1xf32>
    %242 = vector.broadcast %241 : vector<16x1xf32> to vector<16x32xf32>
    %243 = arith.mulf %238, %242 : vector<16x32xf32>
    %244 = vector.broadcast %223 : vector<1x32xf32> to vector<16x32xf32>
    %245 = arith.mulf %243, %244 : vector<16x32xf32>
    %246 = vector.broadcast %225 : vector<1x32xf32> to vector<16x32xf32>
    %247 = arith.addf %245, %246 : vector<16x32xf32>
    %248 = vector.broadcast %6 : vector<16x1xf32> to vector<16x32xf32>
    %249 = arith.mulf %247, %248 : vector<16x32xf32>
    %250 = arith.truncf %249 : vector<16x32xf32> to vector<16x32xbf16>
    %c1 = arith.constant 1 : index
    %c0_89 = arith.constant 0 : index
    %c0_90 = arith.constant 0 : index
    %251 = vector.load %arg7[%c1, %c0_89, %c0_90] : memref<2x32x96xbf16, #tpu.memory_space<vmem>>, vector<1x32x96xbf16>
    %252 = vector.shape_cast %251 : vector<1x32x96xbf16> to vector<32x96xbf16>
    %cst_91 = arith.constant dense<0.000000e+00> : vector<16x96xf32>
    %253 = tpu.matmul %250, %252, %cst_91 {dimension_numbers = #tpu.dot_dimension_numbers<[1], [0], [0], [1], [0, 0, 1, 1], [], []>} : vector<16x32xbf16>, vector<32x96xbf16>, vector<16x96xf32> -> vector<16x96xf32>
    %c1_92 = arith.constant 1 : index
    %c0_93 = arith.constant 0 : index
    %c0_94 = arith.constant 0 : index
    %254 = vector.load %arg8[%c1_92, %c0_93, %c0_94] : memref<2x1x96xf32, #tpu.memory_space<vmem>>, vector<1x1x96xf32>
    %255 = vector.shape_cast %254 : vector<1x1x96xf32> to vector<1x96xf32>
    %256 = vector.broadcast %255 : vector<1x96xf32> to vector<16x96xf32>
    %257 = arith.addf %253, %256 : vector<16x96xf32>
    %c1_95 = arith.constant 1 : index
    %c0_96 = arith.constant 0 : index
    %c0_97 = arith.constant 0 : index
    %258 = vector.load %arg9[%c1_95, %c0_96, %c0_97] : memref<2x32x32xbf16, #tpu.memory_space<vmem>>, vector<1x32x32xbf16>
    %259 = vector.shape_cast %258 : vector<1x32x32xbf16> to vector<32x32xbf16>
    %260 = vector.extract_strided_slice %257 {offsets = [0, 0], sizes = [16, 16], strides = [1, 1]} : vector<16x96xf32> to vector<16x16xf32>
    %261 = arith.truncf %260 : vector<16x16xf32> to vector<16x16xbf16>
    %262 = vector.extract_strided_slice %257 {offsets = [0, 32], sizes = [16, 16], strides = [1, 1]} : vector<16x96xf32> to vector<16x16xf32>
    %263 = arith.truncf %262 : vector<16x16xf32> to vector<16x16xbf16>
    %264 = vector.extract_strided_slice %257 {offsets = [0, 64], sizes = [16, 16], strides = [1, 1]} : vector<16x96xf32> to vector<16x16xf32>
    %265 = arith.truncf %264 : vector<16x16xf32> to vector<16x16xbf16>
    %cst_98 = arith.constant dense<0.000000e+00> : vector<16x16xf32>
    %266 = tpu.matmul %261, %263, %cst_98 {dimension_numbers = #tpu.dot_dimension_numbers<[1], [1], [0], [0], [0, 0, 1, 0], [], []>} : vector<16x16xbf16>, vector<16x16xbf16>, vector<16x16xf32> -> vector<16x16xf32>
    %cst_99 = arith.constant 2.500000e-01 : f32
    %267 = vector.broadcast %cst_99 : f32 to vector<16x16xf32>
    %268 = arith.mulf %266, %267 : vector<16x16xf32>
    %269 = arith.addf %268, %26 : vector<16x16xf32>
    %cst_100 = arith.constant dense<0xFF800000> : vector<16xf32>
    %270 = vector.multi_reduction <maximumf>, %269, %cst_100 [1] : vector<16x16xf32> to vector<16xf32>
    %271 = vector.shape_cast %270 : vector<16xf32> to vector<16x1xf32>
    %272 = vector.broadcast %271 : vector<16x1xf32> to vector<16x16xf32>
    %273 = arith.subf %269, %272 : vector<16x16xf32>
    %274 = math.exp %273 : vector<16x16xf32>
    %cst_101 = arith.constant dense<0.000000e+00> : vector<16xf32>
    %275 = vector.multi_reduction <add>, %274, %cst_101 [1] : vector<16x16xf32> to vector<16xf32>
    %276 = vector.shape_cast %275 : vector<16xf32> to vector<16x1xf32>
    %277 = tpu.reciprocal %276 {approx = true} : vector<16x1xf32> -> vector<16x1xf32>
    %278 = vector.broadcast %277 : vector<16x1xf32> to vector<16x16xf32>
    %279 = arith.mulf %274, %278 : vector<16x16xf32>
    %280 = arith.truncf %279 : vector<16x16xf32> to vector<16x16xbf16>
    %cst_102 = arith.constant dense<0.000000e+00> : vector<16x16xf32>
    %281 = tpu.matmul %280, %265, %cst_102 {dimension_numbers = #tpu.dot_dimension_numbers<[1], [0], [0], [1], [0, 0, 1, 1], [], []>} : vector<16x16xbf16>, vector<16x16xbf16>, vector<16x16xf32> -> vector<16x16xf32>
    %282 = arith.truncf %281 : vector<16x16xf32> to vector<16x16xbf16>
    %283 = vector.extract_strided_slice %259 {offsets = [0, 0], sizes = [16, 32], strides = [1, 1]} : vector<32x32xbf16> to vector<16x32xbf16>
    %cst_103 = arith.constant dense<0.000000e+00> : vector<16x32xf32>
    %284 = tpu.matmul %282, %283, %cst_103 {dimension_numbers = #tpu.dot_dimension_numbers<[1], [0], [0], [1], [0, 0, 1, 1], [], []>} : vector<16x16xbf16>, vector<16x32xbf16>, vector<16x32xf32> -> vector<16x32xf32>
    %285 = vector.extract_strided_slice %257 {offsets = [0, 16], sizes = [16, 16], strides = [1, 1]} : vector<16x96xf32> to vector<16x16xf32>
    %286 = arith.truncf %285 : vector<16x16xf32> to vector<16x16xbf16>
    %287 = vector.extract_strided_slice %257 {offsets = [0, 48], sizes = [16, 16], strides = [1, 1]} : vector<16x96xf32> to vector<16x16xf32>
    %288 = arith.truncf %287 : vector<16x16xf32> to vector<16x16xbf16>
    %289 = vector.extract_strided_slice %257 {offsets = [0, 80], sizes = [16, 16], strides = [1, 1]} : vector<16x96xf32> to vector<16x16xf32>
    %290 = arith.truncf %289 : vector<16x16xf32> to vector<16x16xbf16>
    %cst_104 = arith.constant dense<0.000000e+00> : vector<16x16xf32>
    %291 = tpu.matmul %286, %288, %cst_104 {dimension_numbers = #tpu.dot_dimension_numbers<[1], [1], [0], [0], [0, 0, 1, 0], [], []>} : vector<16x16xbf16>, vector<16x16xbf16>, vector<16x16xf32> -> vector<16x16xf32>
    %cst_105 = arith.constant 2.500000e-01 : f32
    %292 = vector.broadcast %cst_105 : f32 to vector<16x16xf32>
    %293 = arith.mulf %291, %292 : vector<16x16xf32>
    %294 = arith.addf %293, %26 : vector<16x16xf32>
    %cst_106 = arith.constant dense<0xFF800000> : vector<16xf32>
    %295 = vector.multi_reduction <maximumf>, %294, %cst_106 [1] : vector<16x16xf32> to vector<16xf32>
    %296 = vector.shape_cast %295 : vector<16xf32> to vector<16x1xf32>
    %297 = vector.broadcast %296 : vector<16x1xf32> to vector<16x16xf32>
    %298 = arith.subf %294, %297 : vector<16x16xf32>
    %299 = math.exp %298 : vector<16x16xf32>
    %cst_107 = arith.constant dense<0.000000e+00> : vector<16xf32>
    %300 = vector.multi_reduction <add>, %299, %cst_107 [1] : vector<16x16xf32> to vector<16xf32>
    %301 = vector.shape_cast %300 : vector<16xf32> to vector<16x1xf32>
    %302 = tpu.reciprocal %301 {approx = true} : vector<16x1xf32> -> vector<16x1xf32>
    %303 = vector.broadcast %302 : vector<16x1xf32> to vector<16x16xf32>
    %304 = arith.mulf %299, %303 : vector<16x16xf32>
    %305 = arith.truncf %304 : vector<16x16xf32> to vector<16x16xbf16>
    %cst_108 = arith.constant dense<0.000000e+00> : vector<16x16xf32>
    %306 = tpu.matmul %305, %290, %cst_108 {dimension_numbers = #tpu.dot_dimension_numbers<[1], [0], [0], [1], [0, 0, 1, 1], [], []>} : vector<16x16xbf16>, vector<16x16xbf16>, vector<16x16xf32> -> vector<16x16xf32>
    %307 = arith.truncf %306 : vector<16x16xf32> to vector<16x16xbf16>
    %308 = vector.extract_strided_slice %259 {offsets = [16, 0], sizes = [16, 32], strides = [1, 1]} : vector<32x32xbf16> to vector<16x32xbf16>
    %cst_109 = arith.constant dense<0.000000e+00> : vector<16x32xf32>
    %309 = tpu.matmul %307, %308, %cst_109 {dimension_numbers = #tpu.dot_dimension_numbers<[1], [0], [0], [1], [0, 0, 1, 1], [], []>} : vector<16x16xbf16>, vector<16x32xbf16>, vector<16x32xf32> -> vector<16x32xf32>
    %310 = arith.addf %284, %309 : vector<16x32xf32>
    %c1_110 = arith.constant 1 : index
    %c0_111 = arith.constant 0 : index
    %c0_112 = arith.constant 0 : index
    %311 = vector.load %arg10[%c1_110, %c0_111, %c0_112] : memref<2x1x32xf32, #tpu.memory_space<vmem>>, vector<1x1x32xf32>
    %312 = vector.shape_cast %311 : vector<1x1x32xf32> to vector<1x32xf32>
    %313 = vector.broadcast %312 : vector<1x32xf32> to vector<16x32xf32>
    %314 = arith.addf %310, %313 : vector<16x32xf32>
    %315 = arith.addf %249, %314 : vector<16x32xf32>
    %c1_113 = arith.constant 1 : index
    %c0_114 = arith.constant 0 : index
    %c0_115 = arith.constant 0 : index
    %316 = vector.load %arg11[%c1_113, %c0_114, %c0_115] : memref<2x1x32xf32, #tpu.memory_space<vmem>>, vector<1x1x32xf32>
    %317 = vector.shape_cast %316 : vector<1x1x32xf32> to vector<1x32xf32>
    %c1_116 = arith.constant 1 : index
    %c0_117 = arith.constant 0 : index
    %c0_118 = arith.constant 0 : index
    %318 = vector.load %arg12[%c1_116, %c0_117, %c0_118] : memref<2x1x32xf32, #tpu.memory_space<vmem>>, vector<1x1x32xf32>
    %319 = vector.shape_cast %318 : vector<1x1x32xf32> to vector<1x32xf32>
    %cst_119 = arith.constant dense<0.000000e+00> : vector<16xf32>
    %320 = vector.multi_reduction <add>, %315, %cst_119 [1] : vector<16x32xf32> to vector<16xf32>
    %321 = vector.shape_cast %320 : vector<16xf32> to vector<16x1xf32>
    %cst_120 = arith.constant 3.200000e+01 : f32
    %322 = vector.broadcast %cst_120 : f32 to vector<16x1xf32>
    %323 = arith.divf %321, %322 : vector<16x1xf32>
    %324 = vector.broadcast %323 : vector<16x1xf32> to vector<16x32xf32>
    %325 = arith.subf %315, %324 : vector<16x32xf32>
    %326 = arith.mulf %325, %325 : vector<16x32xf32>
    %cst_121 = arith.constant dense<0.000000e+00> : vector<16xf32>
    %327 = vector.multi_reduction <add>, %326, %cst_121 [1] : vector<16x32xf32> to vector<16xf32>
    %328 = vector.shape_cast %327 : vector<16xf32> to vector<16x1xf32>
    %cst_122 = arith.constant 3.200000e+01 : f32
    %329 = vector.broadcast %cst_122 : f32 to vector<16x1xf32>
    %330 = arith.divf %328, %329 : vector<16x1xf32>
    %331 = vector.broadcast %323 : vector<16x1xf32> to vector<16x32xf32>
    %332 = arith.subf %315, %331 : vector<16x32xf32>
    %cst_123 = arith.constant 9.99999974E-6 : f32
    %333 = vector.broadcast %cst_123 : f32 to vector<16x1xf32>
    %334 = arith.addf %330, %333 : vector<16x1xf32>
    %335 = math.rsqrt %334 : vector<16x1xf32>
    %336 = vector.broadcast %335 : vector<16x1xf32> to vector<16x32xf32>
    %337 = arith.mulf %332, %336 : vector<16x32xf32>
    %338 = vector.broadcast %317 : vector<1x32xf32> to vector<16x32xf32>
    %339 = arith.mulf %337, %338 : vector<16x32xf32>
    %340 = vector.broadcast %319 : vector<1x32xf32> to vector<16x32xf32>
    %341 = arith.addf %339, %340 : vector<16x32xf32>
    %342 = vector.broadcast %6 : vector<16x1xf32> to vector<16x32xf32>
    %343 = arith.mulf %341, %342 : vector<16x32xf32>
    %c1_124 = arith.constant 1 : index
    %c0_125 = arith.constant 0 : index
    %c0_126 = arith.constant 0 : index
    %344 = vector.load %arg13[%c1_124, %c0_125, %c0_126] : memref<2x96x128xbf16, #tpu.memory_space<vmem>>, vector<1x96x128xbf16>
    %345 = vector.shape_cast %344 : vector<1x96x128xbf16> to vector<96x128xbf16>
    %c1_127 = arith.constant 1 : index
    %c0_128 = arith.constant 0 : index
    %c0_129 = arith.constant 0 : index
    %346 = vector.load %arg14[%c1_127, %c0_128, %c0_129] : memref<2x1x128xf32, #tpu.memory_space<vmem>>, vector<1x1x128xf32>
    %347 = vector.shape_cast %346 : vector<1x1x128xf32> to vector<1x128xf32>
    %cst_130 = arith.constant 0.000000e+00 : f32
    %348 = vector.broadcast %cst_130 : f32 to vector<1x32xf32>
    %349 = vector.extract_strided_slice %343 {offsets = [0, 0], sizes = [15, 32], strides = [1, 1]} : vector<16x32xf32> to vector<15x32xf32>
    %350 = tpu.concatenate %348, %349 in 0 : vector<1x32xf32>, vector<15x32xf32> -> vector<16x32xf32>
    %351 = vector.broadcast %36 : vector<16x1xf32> to vector<16x32xf32>
    %352 = arith.mulf %350, %351 : vector<16x32xf32>
    %353 = vector.broadcast %45 : vector<16x1xf32> to vector<16x32xf32>
    %354 = arith.mulf %343, %353 : vector<16x32xf32>
    %cst_131 = arith.constant 0.000000e+00 : f32
    %355 = vector.broadcast %cst_131 : f32 to vector<1x32xf32>
    %356 = vector.extract_strided_slice %343 {offsets = [1, 0], sizes = [15, 32], strides = [1, 1]} : vector<16x32xf32> to vector<15x32xf32>
    %357 = tpu.concatenate %356, %355 in 0 : vector<15x32xf32>, vector<1x32xf32> -> vector<16x32xf32>
    %358 = vector.broadcast %54 : vector<16x1xf32> to vector<16x32xf32>
    %359 = arith.mulf %357, %358 : vector<16x32xf32>
    %360 = tpu.concatenate %352, %354, %359 in 1 : vector<16x32xf32>, vector<16x32xf32>, vector<16x32xf32> -> vector<16x96xf32>
    %361 = arith.truncf %360 : vector<16x96xf32> to vector<16x96xbf16>
    %cst_132 = arith.constant dense<0.000000e+00> : vector<16x128xf32>
    %362 = tpu.matmul %361, %345, %cst_132 {dimension_numbers = #tpu.dot_dimension_numbers<[1], [0], [0], [1], [0, 0, 1, 1], [], []>} : vector<16x96xbf16>, vector<96x128xbf16>, vector<16x128xf32> -> vector<16x128xf32>
    %363 = vector.broadcast %347 : vector<1x128xf32> to vector<16x128xf32>
    %364 = arith.addf %362, %363 : vector<16x128xf32>
    %cst_133 = arith.constant 0.000000e+00 : f32
    %365 = vector.broadcast %cst_133 : f32 to vector<16x128xf32>
    %366 = arith.maximumf %364, %365 : vector<16x128xf32>
    %c1_134 = arith.constant 1 : index
    %c0_135 = arith.constant 0 : index
    %c0_136 = arith.constant 0 : index
    %367 = vector.load %arg15[%c1_134, %c0_135, %c0_136] : memref<2x384x32xbf16, #tpu.memory_space<vmem>>, vector<1x384x32xbf16>
    %368 = vector.shape_cast %367 : vector<1x384x32xbf16> to vector<384x32xbf16>
    %c1_137 = arith.constant 1 : index
    %c0_138 = arith.constant 0 : index
    %c0_139 = arith.constant 0 : index
    %369 = vector.load %arg16[%c1_137, %c0_138, %c0_139] : memref<2x1x32xf32, #tpu.memory_space<vmem>>, vector<1x1x32xf32>
    %370 = vector.shape_cast %369 : vector<1x1x32xf32> to vector<1x32xf32>
    %cst_140 = arith.constant 0.000000e+00 : f32
    %371 = vector.broadcast %cst_140 : f32 to vector<1x128xf32>
    %372 = vector.extract_strided_slice %366 {offsets = [0, 0], sizes = [15, 128], strides = [1, 1]} : vector<16x128xf32> to vector<15x128xf32>
    %373 = tpu.concatenate %371, %372 in 0 : vector<1x128xf32>, vector<15x128xf32> -> vector<16x128xf32>
    %374 = vector.broadcast %36 : vector<16x1xf32> to vector<16x128xf32>
    %375 = arith.mulf %373, %374 : vector<16x128xf32>
    %376 = vector.broadcast %45 : vector<16x1xf32> to vector<16x128xf32>
    %377 = arith.mulf %366, %376 : vector<16x128xf32>
    %cst_141 = arith.constant 0.000000e+00 : f32
    %378 = vector.broadcast %cst_141 : f32 to vector<1x128xf32>
    %379 = vector.extract_strided_slice %366 {offsets = [1, 0], sizes = [15, 128], strides = [1, 1]} : vector<16x128xf32> to vector<15x128xf32>
    %380 = tpu.concatenate %379, %378 in 0 : vector<15x128xf32>, vector<1x128xf32> -> vector<16x128xf32>
    %381 = vector.broadcast %54 : vector<16x1xf32> to vector<16x128xf32>
    %382 = arith.mulf %380, %381 : vector<16x128xf32>
    %383 = tpu.concatenate %375, %377, %382 in 1 : vector<16x128xf32>, vector<16x128xf32>, vector<16x128xf32> -> vector<16x384xf32>
    %384 = arith.truncf %383 : vector<16x384xf32> to vector<16x384xbf16>
    %cst_142 = arith.constant dense<0.000000e+00> : vector<16x32xf32>
    %385 = tpu.matmul %384, %368, %cst_142 {dimension_numbers = #tpu.dot_dimension_numbers<[1], [0], [0], [1], [0, 0, 1, 1], [], []>} : vector<16x384xbf16>, vector<384x32xbf16>, vector<16x32xf32> -> vector<16x32xf32>
    %386 = vector.broadcast %370 : vector<1x32xf32> to vector<16x32xf32>
    %387 = arith.addf %385, %386 : vector<16x32xf32>
    %388 = arith.addf %343, %387 : vector<16x32xf32>
    %c1_143 = arith.constant 1 : index
    %c0_144 = arith.constant 0 : index
    %c0_145 = arith.constant 0 : index
    %389 = vector.load %arg17[%c1_143, %c0_144, %c0_145] : memref<2x1x32xf32, #tpu.memory_space<vmem>>, vector<1x1x32xf32>
    %390 = vector.shape_cast %389 : vector<1x1x32xf32> to vector<1x32xf32>
    %c1_146 = arith.constant 1 : index
    %c0_147 = arith.constant 0 : index
    %c0_148 = arith.constant 0 : index
    %391 = vector.load %arg18[%c1_146, %c0_147, %c0_148] : memref<2x1x32xf32, #tpu.memory_space<vmem>>, vector<1x1x32xf32>
    %392 = vector.shape_cast %391 : vector<1x1x32xf32> to vector<1x32xf32>
    %cst_149 = arith.constant dense<0.000000e+00> : vector<16xf32>
    %393 = vector.multi_reduction <add>, %388, %cst_149 [1] : vector<16x32xf32> to vector<16xf32>
    %394 = vector.shape_cast %393 : vector<16xf32> to vector<16x1xf32>
    %cst_150 = arith.constant 3.200000e+01 : f32
    %395 = vector.broadcast %cst_150 : f32 to vector<16x1xf32>
    %396 = arith.divf %394, %395 : vector<16x1xf32>
    %397 = vector.broadcast %396 : vector<16x1xf32> to vector<16x32xf32>
    %398 = arith.subf %388, %397 : vector<16x32xf32>
    %399 = arith.mulf %398, %398 : vector<16x32xf32>
    %cst_151 = arith.constant dense<0.000000e+00> : vector<16xf32>
    %400 = vector.multi_reduction <add>, %399, %cst_151 [1] : vector<16x32xf32> to vector<16xf32>
    %401 = vector.shape_cast %400 : vector<16xf32> to vector<16x1xf32>
    %cst_152 = arith.constant 3.200000e+01 : f32
    %402 = vector.broadcast %cst_152 : f32 to vector<16x1xf32>
    %403 = arith.divf %401, %402 : vector<16x1xf32>
    %404 = vector.broadcast %396 : vector<16x1xf32> to vector<16x32xf32>
    %405 = arith.subf %388, %404 : vector<16x32xf32>
    %cst_153 = arith.constant 9.99999974E-6 : f32
    %406 = vector.broadcast %cst_153 : f32 to vector<16x1xf32>
    %407 = arith.addf %403, %406 : vector<16x1xf32>
    %408 = math.rsqrt %407 : vector<16x1xf32>
    %409 = vector.broadcast %408 : vector<16x1xf32> to vector<16x32xf32>
    %410 = arith.mulf %405, %409 : vector<16x32xf32>
    %411 = vector.broadcast %390 : vector<1x32xf32> to vector<16x32xf32>
    %412 = arith.mulf %410, %411 : vector<16x32xf32>
    %413 = vector.broadcast %392 : vector<1x32xf32> to vector<16x32xf32>
    %414 = arith.addf %412, %413 : vector<16x32xf32>
    %415 = vector.broadcast %6 : vector<16x1xf32> to vector<16x32xf32>
    %416 = arith.mulf %414, %415 : vector<16x32xf32>
    %417 = vector.shape_cast %416 : vector<16x32xf32> to vector<2x8x32xf32>
    %c0_154 = arith.constant 0 : index
    %c0_155 = arith.constant 0 : index
    %c0_156 = arith.constant 0 : index
    %418 = vector.load %arg19[%c0_154, %c0_155, %c0_156] : memref<2x8x32xf32, #tpu.memory_space<vmem>>, vector<2x8x32xf32>
    tpu.vector_store %arg19[%c0_154, %c0_155, %c0_156], %417 {strides = array<i32>} : memref<2x8x32xf32, #tpu.memory_space<vmem>>, vector<2x8x32xf32>,
    return
  }
  func.func @transform_0(%arg0: i32) -> (i32, i32, i32) {
    %c0_i32 = arith.constant 0 : i32
    %c0_i32_0 = arith.constant 0 : i32
    %c0_i32_1 = arith.constant 0 : i32
    return %arg0, %c0_i32, %c0_i32_0 : i32, i32, i32
  }
  func.func @transform_1(%arg0: i32) -> (i32, i32, i32) {
    %c0_i32 = arith.constant 0 : i32
    %c0_i32_0 = arith.constant 0 : i32
    %c0_i32_1 = arith.constant 0 : i32
    return %arg0, %c0_i32, %c0_i32_0 : i32, i32, i32
  }
  func.func @transform_2(%arg0: i32) -> (i32, i32, i32) {
    %c0_i32 = arith.constant 0 : i32
    %c0_i32_0 = arith.constant 0 : i32
    %c0_i32_1 = arith.constant 0 : i32
    return %arg0, %c0_i32, %c0_i32_0 : i32, i32, i32
  }
  func.func @transform_3(%arg0: i32) -> (i32, i32) {
    %c0_i32 = arith.constant 0 : i32
    %c0_i32_0 = arith.constant 0 : i32
    %c0_i32_1 = arith.constant 0 : i32
    return %c0_i32, %c0_i32_0 : i32, i32
  }
  func.func @transform_4(%arg0: i32) -> (i32, i32) {
    %c0_i32 = arith.constant 0 : i32
    %c0_i32_0 = arith.constant 0 : i32
    %c0_i32_1 = arith.constant 0 : i32
    return %c0_i32, %c0_i32_0 : i32, i32
  }
  func.func @transform_5(%arg0: i32) -> (i32, i32) {
    %c0_i32 = arith.constant 0 : i32
    %c0_i32_0 = arith.constant 0 : i32
    %c0_i32_1 = arith.constant 0 : i32
    return %c0_i32, %c0_i32_0 : i32, i32
  }
  func.func @transform_6(%arg0: i32) -> (i32, i32, i32) {
    %c0_i32 = arith.constant 0 : i32
    %c0_i32_0 = arith.constant 0 : i32
    %c0_i32_1 = arith.constant 0 : i32
    %c0_i32_2 = arith.constant 0 : i32
    return %c0_i32, %c0_i32_0, %c0_i32_1 : i32, i32, i32
  }
  func.func @transform_7(%arg0: i32) -> (i32, i32, i32) {
    %c0_i32 = arith.constant 0 : i32
    %c0_i32_0 = arith.constant 0 : i32
    %c0_i32_1 = arith.constant 0 : i32
    %c0_i32_2 = arith.constant 0 : i32
    return %c0_i32, %c0_i32_0, %c0_i32_1 : i32, i32, i32
  }
  func.func @transform_8(%arg0: i32) -> (i32, i32, i32) {
    %c0_i32 = arith.constant 0 : i32
    %c0_i32_0 = arith.constant 0 : i32
    %c0_i32_1 = arith.constant 0 : i32
    %c0_i32_2 = arith.constant 0 : i32
    return %c0_i32, %c0_i32_0, %c0_i32_1 : i32, i32, i32
  }
  func.func @transform_9(%arg0: i32) -> (i32, i32, i32) {
    %c0_i32 = arith.constant 0 : i32
    %c0_i32_0 = arith.constant 0 : i32
    %c0_i32_1 = arith.constant 0 : i32
    %c0_i32_2 = arith.constant 0 : i32
    return %c0_i32, %c0_i32_0, %c0_i32_1 : i32, i32, i32
  }
  func.func @transform_10(%arg0: i32) -> (i32, i32, i32) {
    %c0_i32 = arith.constant 0 : i32
    %c0_i32_0 = arith.constant 0 : i32
    %c0_i32_1 = arith.constant 0 : i32
    %c0_i32_2 = arith.constant 0 : i32
    return %c0_i32, %c0_i32_0, %c0_i32_1 : i32, i32, i32
  }
  func.func @transform_11(%arg0: i32) -> (i32, i32, i32) {
    %c0_i32 = arith.constant 0 : i32
    %c0_i32_0 = arith.constant 0 : i32
    %c0_i32_1 = arith.constant 0 : i32
    %c0_i32_2 = arith.constant 0 : i32
    return %c0_i32, %c0_i32_0, %c0_i32_1 : i32, i32, i32
  }
  func.func @transform_12(%arg0: i32) -> (i32, i32, i32) {
    %c0_i32 = arith.constant 0 : i32
    %c0_i32_0 = arith.constant 0 : i32
    %c0_i32_1 = arith.constant 0 : i32
    %c0_i32_2 = arith.constant 0 : i32
    return %c0_i32, %c0_i32_0, %c0_i32_1 : i32, i32, i32
  }
  func.func @transform_13(%arg0: i32) -> (i32, i32, i32) {
    %c0_i32 = arith.constant 0 : i32
    %c0_i32_0 = arith.constant 0 : i32
    %c0_i32_1 = arith.constant 0 : i32
    %c0_i32_2 = arith.constant 0 : i32
    return %c0_i32, %c0_i32_0, %c0_i32_1 : i32, i32, i32
  }
  func.func @transform_14(%arg0: i32) -> (i32, i32, i32) {
    %c0_i32 = arith.constant 0 : i32
    %c0_i32_0 = arith.constant 0 : i32
    %c0_i32_1 = arith.constant 0 : i32
    %c0_i32_2 = arith.constant 0 : i32
    return %c0_i32, %c0_i32_0, %c0_i32_1 : i32, i32, i32
  }
  func.func @transform_15(%arg0: i32) -> (i32, i32, i32) {
    %c0_i32 = arith.constant 0 : i32
    %c0_i32_0 = arith.constant 0 : i32
    %c0_i32_1 = arith.constant 0 : i32
    %c0_i32_2 = arith.constant 0 : i32
    return %c0_i32, %c0_i32_0, %c0_i32_1 : i32, i32, i32
  }
  func.func @transform_16(%arg0: i32) -> (i32, i32, i32) {
    %c0_i32 = arith.constant 0 : i32
    %c0_i32_0 = arith.constant 0 : i32
    %c0_i32_1 = arith.constant 0 : i32
    %c0_i32_2 = arith.constant 0 : i32
    return %c0_i32, %c0_i32_0, %c0_i32_1 : i32, i32, i32
  }
  func.func @transform_17(%arg0: i32) -> (i32, i32, i32) {
    %c0_i32 = arith.constant 0 : i32
    %c0_i32_0 = arith.constant 0 : i32
    %c0_i32_1 = arith.constant 0 : i32
    %c0_i32_2 = arith.constant 0 : i32
    return %c0_i32, %c0_i32_0, %c0_i32_1 : i32, i32, i32
  }
  func.func @transform_18(%arg0: i32) -> (i32, i32, i32) {
    %c0_i32 = arith.constant 0 : i32
    %c0_i32_0 = arith.constant 0 : i32
    %c0_i32_1 = arith.constant 0 : i32
    return %arg0, %c0_i32, %c0_i32_0 : i32, i32, i32
  }
}

</mosaic_0001>

<bundles_post_ra>
// kernel: tpu_custom_call.1
= control target key start
LH: loop header
LB: loop body
LE: loop exit
PB: predicated region body
PF: predicated region fallthrough
CT: control target
= control target key end

     0   :  { %s3714_s0 = inlined_call_operand.vmem [shape: s32[2,1,1], index: 0, kind: input, shape index: {}]   ;;  %s3715_s1 = inlined_call_operand.vmem [shape: s32[2,8,1], index: 1, kind: input, shape index: {}]   ;;  %s3716_s2 = inlined_call_operand.vmem [shape: s32[2,8,1], index: 2, kind: input, shape index: {}]   ;;  %s3717_s3 = inlined_call_operand.<no memory space> [shape: f32[1,1], index: 3, kind: input, shape index: {}]   ;;  %s3718_s4 = inlined_call_operand.vmem [shape: bf16[16,16], index: 4, kind: input, shape index: {}]   ;;  %s3719_s5 = inlined_call_operand.vmem [shape: bf16[32,16], index: 5, kind: input, shape index: {}]   ;;  %s3720_s6 = inlined_call_operand.vmem [shape: bf16[2,32,96], index: 6, kind: input, shape index: {}]   ;;  %s3721_s7 = inlined_call_operand.vmem [shape: f32[2,1,96], index: 7, kind: input, shape index: {}]   ;;  %s3722_s8 = inlined_call_operand.vmem [shape: bf16[2,32,32], index: 8, kind: input, shape index: {}]   ;;  %s3723_s9 = inlined_call_operand.vmem [shape: f32[2,1,32], index: 9, kind: input, shape index: {}]   ;;  %s3724_s10 = inlined_call_operand.vmem [shape: f32[2,1,32], index: 10, kind: input, shape index: {}]   ;;  %s3725_s11 = inlined_call_operand.vmem [shape: f32[2,1,32], index: 11, kind: input, shape index: {}]   ;;  %s3726_s12 = inlined_call_operand.vmem [shape: bf16[2,96,128], index: 12, kind: input, shape index: {}]   ;;  %s3727_s13 = inlined_call_operand.vmem [shape: f32[2,1,128], index: 13, kind: input, shape index: {}]   ;;  %s3728_s14 = inlined_call_operand.vmem [shape: bf16[2,384,32], index: 14, kind: input, shape index: {}]   ;;  %s3729_s15 = inlined_call_operand.vmem [shape: f32[2,1,32], index: 15, kind: input, shape index: {}]   ;;  %s3730_s16 = inlined_call_operand.vmem [shape: f32[2,1,32], index: 16, kind: input, shape index: {}]   ;;  %s3731_s17 = inlined_call_operand.vmem [shape: f32[2,1,32], index: 17, kind: input, shape index: {}]   ;;  %s3732_s18 = inlined_call_operand.hbm [shape: f32[2,8,32], index: 18, kind: output, shape index: {}]  }
   0x1   :  { %3737 = sst [smem:[#allocation6_spill]] %s3714_s0 }
   0x2   :  { %3738 = sst [smem:[#allocation7_spill]] %s3715_s1 }
   0x3   :  { %3739 = sst [smem:[#allocation8_spill]] %s3716_s2 }
   0x4   :  { %3740 = sst [smem:[#allocation9_spill]] %s3727_s13 }
   0x5   :  { %s3741_s29 = sld [smem:[#allocation7_spill]]  ;;  %v64_v2 = vlaneseq  ;;  %v2983_v3 = vmov 0   ;;  %v2984_v9 = vmov 0.0   ;;  %v2842_v10 = vld [vmem:[%s3718_s4] sm:$0xff]   ;;  %vm2985_vm0 = vmmov 0  }
   0x6   :  { %s3742_s13 = sld [smem:[#allocation8_spill]]  ;;  %2815 = vset.pattern.permute.xlu0 %v2983_v3  ;;  %2816 = vset.pattern.permute.xlu1 %v2983_v3 }
   0x7   :  { %s3743_s22 = sld [smem:[#allocation6_spill]]  ;;  %v3118_v8 = vshrl.u32 %v64_v2, 7  ;;  %2625 = vmatprep.subr.bf16.mxu0 %v2984_v9  ;;  %2647 = vmatprep.subr.bf16.mxu1 %v2984_v9 }
   0x8   :  { %2626 = vmatpush3.bf16.msra.mxu0 %v2842_v10  ;;  %2627 = vmatprep.mubr.msk.bf16.mxu0 %vm2985_vm0, %v2984_v9 }
   0x9   :  { %v3126_v11 = vsub.s32 0, %v3118_v8  ;;  %2631 = vmatprep.subr.bf16.mxu0 %v2984_v9  ;;  %2649 = vmatprep.mubr.msk.bf16.mxu1 %vm2985_vm0, %v2984_v9 }
   0xb   :  { %v170_v0 = vld [vmem:[%s3741_s29] sm:$0xff]  ;;  %v171_v4 = vld [vmem:[%s3741_s29 + $0x8] sm:$0xff] }
   0xc   :  { %v185_v1 = vld [vmem:[%s3742_s13] sm:$0xff]  ;;  %173 = vperm.xlu0 %2815, %v170_v0   ;;  %v186_v7 = vld [vmem:[%s3742_s13 + $0x8] sm:$0xff] }
   0xd   :  { %v3108_v5 = vld [vmem:[%s3743_s22] sm:$0x1]  ;;  %v3113_v6 = vld [vmem:[%s3743_s22 + $0x1] sm:$0x1]  ;;  %188 = vperm.xlu1 %2816, %v185_v1  }
   0xe   :  { %v69_v12 = vrot.slane %v3108_v5, %v3126_v11  ;;  %v73_v13 = vrot.slane %v3113_v6, %v3126_v11 }
  0x10   :  { %176 = vperm.xlu0 %2815, %v171_v4   ;;  %vm74_vm1 = vcmp.lt.s32.totalorder %v3118_v8, %v69_v12  ;;  %vm75_vm2 = vcmp.lt.s32.totalorder %v3118_v8, %v73_v13 }
  0x11   :  { %191 = vperm.xlu1 %2816, %v186_v7   ;;  %v2325_v14 = vsel %vm74_vm1, 1.0, %v2984_v9  ;;  %v2326_v15 = vsel %vm75_vm2, 1.0, %v2984_v9 }
  0x12   :  { %v2817_v16 = vpack.i.bf16 %v2326_v15, %v2325_v14 }
  0x14   :  { %2818 = vperm.xlu0 %2815, %v2817_v16  }
  0x15   :  { %24 = vsyncpa [#allocation4], 0  ;;  %v3141_v17 = vand.u32 127, %v64_v2  ;;  %vm208_vm5 = vcmask 130048   ;;  %v2843_v24 = vld [vmem:[%s3719_s5 + $0x8] sm:$0xff]   ;;  %v2844_v26 = vld [vmem:[%s3719_s5] sm:$0xff]   ;;  %v315_v36 = vstv %s3717_s3 }
  0x16   :  { %vm269_vm8 = vcmask 261120   ;;  %v2845_v30 = vld [vmem:[%s3720_s6 + $0x8] sm:$0xff]   ;;  %v2846_v33 = vld [vmem:[%s3720_s6] sm:$0xff]   ;;  %s2986_s21 = smov 16   ;;  %s2987_s2 = smov 80   ;;  %vm123_vm10 = vcmask 64512  }
  0x17   :  { %v2338_v54 = vld [vmem:[%s3721_s7] ss:$0 sm:$0xff]  ;;  %s2988_s23 = smov 96   ;;  %s2989_s24 = smov 112   ;;  %v2990_v61 = vmov 1934713408  }
  0x18   :  { %v114_v62 = vunpack.c.l.s4 %v2990_v61  ;;  %s2991_s25 = smov 8   ;;  %v2992_v10 = vmov 1966171168   ;;  %s2994_s26 = smov 64  }
  0x19   :  { %v98_v12 = vunpack.c.l.s4 %v2992_v10  ;;  %s2995_s27 = smov 48   ;;  %s2996_s28 = smov 32  }
  0x1a   :  { %v115_v63 = vunpack.c.0.s8 %v114_v62  ;;  %s3744_s3 = sld [smem:[#allocation9_spill]] }
  0x1b   :  { %v99_v14 = vunpack.c.0.s8 %v98_v12 }
  0x1c   :  { %v118_v0 = vsub.s32 %v115_v63, %v3118_v8 }
  0x1e   :  { %v131_v1 = vrot.slane %v3118_v8, %v118_v0 }
  0x20   :  { %v132_v2 = vcombine.high %v131_v1, %v2983_v3 }
  0x87   :  { %v174_v18 = vpop.permute.xlu0 %173 }
  0x88   :  { %v189_v19 = vpop.permute.xlu1 %188  ;;  %vm178_vm3 = vcmp.eq.s32.totalorder %v174_v18, %v3141_v17 }
  0x89   :  { %v2329_v21 = vsel %vm178_vm3, 1.0, %v2984_v9  ;;  %vm193_vm6 = vcmp.eq.s32.totalorder %v189_v19, %v3141_v17  ;;  %v102_v19 = vsub.s32 %v99_v14, %v3118_v8  ;;  %vm848_vm3 = vcmask 1046528  }
  0x8a   :  { %v2331_v27 = vsel %vm193_vm6, 1.0, %v2984_v9  ;;  %vm837_vm6 = vcmask 1040384  }
  0x8b   :  { %v177_v20 = vpop.permute.xlu0 %176 }
  0x8c   :  { %vm179_vm4 = vcmp.eq.s32.totalorder %v177_v20, %v3141_v17  ;;  %v192_v23 = vpop.permute.xlu1 %191 }
  0x8d   :  { %v2330_v22 = vsel %vm179_vm4, 1.0, %v2984_v9  ;;  %vm194_vm7 = vcmp.eq.s32.totalorder %v192_v23, %v3141_v17 }
  0x8e   :  { %v184_v25 = vpack.c.bf16 %v2330_v22, %v2329_v21  ;;  %v2332_v28 = vsel %vm194_vm7, 1.0, %v2984_v9  ;;  %vm875_vm7 = vcmask 523264  }
  0x8f   :  { %v199_v29 = vpack.c.bf16 %v2332_v28, %v2331_v27  ;;  %v2819_v43 = vpop.permute.xlu0 %2818 }
  0x90   :  { %2628 = vmatmul.mubr.msk.bf16.vlgmr.msra.gmra.mxu0 %vm208_vm5, %v184_v25  ;;  %v3177_v46 = vunpack.i.h.bf16 %v2819_v43  ;;  %v3179_v47 = vunpack.i.l.bf16 %v2819_v43 }
  0x91   :  { %2632 = vmatpush3.bf16.msra.mxu0 %v2843_v24  ;;  %2635 = vmatprep.mubr.msk.bf16.mxu0 %vm2985_vm0, %v2984_v9 }
  0x92   :  { %2633 = vmatprep.subr.bf16.mxu0 %v2984_v9 }
  0x95   :  { %2634 = vmatpush3.bf16.msra.mxu0 %v2844_v26 }
  0x96   :  { %2639 = vmatprep.subr.bf16.mxu0 %v2984_v9 }
  0x98   :  { %2636 = vmatmul.mubr.msk.bf16.vlgmr.msra.gmra.mxu0 %vm269_vm8, %v199_v29 }
  0x99   :  { %2643 = vmatprep.mubr.msk.bf16.mxu0 %vm2985_vm0, %v2984_v9  ;;  %2640 = vmatpush3.bf16.msra.mxu0 %v2845_v30 }
  0x9a   :  { %2641 = vmatprep.subr.bf16.mxu0 %v2984_v9 }
  0x9d   :  { %2642 = vmatpush3.bf16.msra.mxu0 %v2846_v33 }
  0x9e   :  { %2653 = vmatprep.subr.bf16.mxu0 %v2984_v9 }
 0x150   :  { %v246_v31 = vpop.f32.mrf.mxu0 }
 0x152   :  { %v2629_v32 = vpop.f32.mrf.mxu0 }
 0x154   :  { %v249_v34 = vpop.f32.mrf.mxu0 }
 0x156   :  { %v2630_v35 = vpop.f32.mrf.mxu0 }
 0x158   :  { %v307_v37 = vpop.f32.mrf.mxu0 }
 0x159   :  { %v316_v38 = vmul.f32 %v315_v36, %v307_v37 }
 0x15a   :  { %v2637_v39 = vpop.f32.mrf.mxu0 }
 0x15b   :  { %320 = vrot.lane.b32.xlu1 %v316_v38, %s2986_s21 }
 0x15c   :  { %v310_v40 = vpop.f32.mrf.mxu0 }
 0x15d   :  { %v317_v41 = vmul.f32 %v315_v36, %v310_v40  ;;  %v2993_v36 = vmov -1e+09  }
 0x15e   :  { %v2638_v42 = vpop.f32.mrf.mxu0 }
 0x15f   :  { %322 = vrot.lane.b32.xlu0 %v317_v41, %s2986_s21 }
 0x1cd   :  { %v321_v44 = vpop.permute.xlu1 %320 }
 0x1ce   :  { %v326_v45 = vsel %vm208_vm5, %v246_v31, %v321_v44 }
 0x1cf   :  { %v3183_v50 = vmul.f32 %v3179_v47, %v326_v45 }
 0x1d1   :  { %v323_v48 = vpop.permute.xlu0 %322 }
 0x1d2   :  { %v327_v49 = vsel %vm208_vm5, %v249_v34, %v323_v48 }
 0x1d3   :  { %v3186_v51 = vmul.f32 %v3177_v46, %v327_v49 }
 0x1d5   :  { %v340_v52 = vpack.c.bf16 %v3186_v51, %v3183_v50 }
 0x1d7   :  { %2644 = vmatmul.mubr.msk.bf16.vlgmr.msra.gmra.mxu0 %vm269_vm8, %v340_v52 }
 0x1d8   :  { %2655 = vmatprep.mubr.msk.bf16.mxu0 %vm2985_vm0, %v2984_v9 }
 0x297   :  { %v401_v53 = vpop.f32.mrf.mxu0 }
 0x298   :  { %v402_v57 = vadd.f32 %v2338_v54, %v401_v53 }
 0x299   :  { %v2645_v55 = vpop.f32.mrf.mxu0 }
 0x29b   :  { %v404_v56 = vpop.f32.mrf.mxu0 }
 0x29c   :  { %v405_v58 = vadd.f32 %v2338_v54, %v404_v56 }
 0x29d   :  { %v2646_v59 = vpop.f32.mrf.mxu0 }
 0x29e   :  { %v3196_v60 = vpack.c.bf16 %v405_v58, %v402_v57 }
 0x2a0   :  { %540 = vrot.lane.b32.xlu0 %v3196_v60, %s2987_s2  ;;  %414 = vrot.lane.b32.xlu1 %v3196_v60, %s2988_s23 }
 0x2a4   :  { %83 = vperm.xlu0 %2815, %v3108_v5   ;;  %538 = vrot.lane.b32.xlu1 %v3196_v60, %s2989_s24 }
 0x2a8   :  { %90 = vperm.xlu1 %2816, %v3113_v6  }
 0x2ac   :  { %133 = vrot.lane.b32.xlu1 %v132_v2, %s2991_s25 }
 0x312   :  { %v415_v4 = vpop.permute.xlu1 %414  ;;  %v541_v7 = vpop.permute.xlu0 %540 }
 0x313   :  { %v420_v5 = vsel %vm208_vm5, %v415_v4, 0  ;;  %v546_v6 = vsel %vm208_vm5, %v541_v7, 0 }
 0x314   :  { %2648 = vmatpush3.bf16.xpose.msra.mxu1 %v420_v5 }
 0x315   :  { %2659 = vmatprep.subr.bf16.mxu1 %v2984_v9 }
 0x316   :  { %v539_v13 = vpop.permute.xlu1 %538 }
 0x31b   :  { %2650 = vmatmul.mubr.msk.bf16.vlgmr.msra.gmra.mxu1 %vm208_vm5, %v3196_v60 }
 0x31c   :  { %2660 = vmatpush3.bf16.xpose.msra.mxu1 %v546_v6  ;;  %2661 = vmatprep.mubr.msk.bf16.mxu1 %vm2985_vm0, %v2984_v9 }
 0x31d   :  { %2671 = vmatprep.subr.bf16.mxu1 %v2984_v9 }
 0x31f   :  { %v84_v15 = vpop.permute.xlu0 %83 }
 0x320   :  { %v88_v18 = vrot.slane %v84_v15, %v3126_v11 }
 0x323   :  { %2662 = vmatmul.mubr.msk.bf16.vlgmr.msra.gmra.mxu1 %vm208_vm5, %v539_v13  ;;  %v91_v16 = vpop.permute.xlu1 %90 }
 0x324   :  { %v95_v20 = vrot.slane %v91_v16, %v3126_v11  ;;  %2673 = vmatprep.mubr.msk.bf16.mxu1 %vm2985_vm0, %v2984_v9 }
 0x326   :  { %v96_v21 = vcombine.low %v88_v18, %v95_v20 }
 0x327   :  { %v134_v29 = vpop.permute.xlu1 %133 }
 0x328   :  { %v103_v22 = vrot.slane %v96_v21, %v102_v19  ;;  %v135_v31 = vsel %vm123_vm10, %v131_v1, %v134_v29 }
 0x329   :  { %v139_v33 = vrot.slane %v135_v31, %v3126_v11 }
 0x32a   :  { %v110_v23 = vrot.slane %v103_v22, %v102_v19 }
 0x32b   :  { %vm140_vm13 = vcmp.eq.s32.totalorder %v139_v33, 0  ;;  %vm141_vm15 = vcmp.eq.s32.totalorder %v139_v33, 1 }
 0x32c   :  { %vm111_vm9 = vcmp.lt.s32.totalorder %v3141_v17, %v110_v23 }
 0x32d   :  { %v112_v24 = vsel %vm111_vm9, 1, %v2983_v3  ;;  %vm921_vm9 = vcmask 785408  }
 0x32e   :  { %v119_v25 = vrot.slane %v112_v24, %v118_v0 }
 0x330   :  { %v120_v26 = vcombine.high %v119_v25, %v2983_v3 }
 0x332   :  { %121 = vrot.lane.b32.xlu0 %v120_v26, %s2991_s25 }
 0x3a4   :  { %v122_v27 = vpop.permute.xlu0 %121 }
 0x3a5   :  { %v124_v28 = vsel %vm123_vm10, %v119_v25, %v122_v27 }
 0x3a6   :  { %vm142_vm11 = vcmp.gt.s32.totalorder %v124_v28, 0 }
 0x3a7   :  { %v143_v30 = vsel %vm142_vm11, 1, %v2983_v3 }
 0x3a8   :  { %v147_v32 = vrot.slane %v143_v30, %v3126_v11 }
 0x3aa   :  { %vm148_vm12 = vcmp.eq.s32.totalorder %v147_v32, 1 }
 0x3ab   :  { %vm149_vm14 = vmand %vm140_vm13, %vm148_vm12 }
 0x3ac   :  { %v3231_v37 = vsel %vm149_vm14, 0.0, %v2993_v36  ;;  %vm150_vm1 = vmand %vm141_vm15, %vm148_vm12 }
 0x3ad   :  { %v3235_v11 = vsel %vm150_vm1, 0.0, %v2993_v36 }
 0x3db   :  { %v456_v17 = vpop.f32.mrf.mxu1 }
 0x3dc   :  { %v463_v34 = vmul.f32 0.25, %v456_v17 }
 0x3dd   :  { %v2651_v35 = vpop.f32.mrf.mxu1 }
 0x3de   :  { %v465_v38 = vadd.f32 %v463_v34, %v3231_v37  ;;  %v2847_v34 = vld [vmem:[%s3722_s8] sm:$0xff]   ;;  %v2848_v35 = vld [vmem:[%s3722_s8 + $0x8] sm:$0xff]  }
 0x3df   :  { %v459_v39 = vpop.f32.mrf.mxu1  ;;  %2672 = vmatpush3.bf16.msra.mxu1 %v2848_v35 }
 0x3e0   :  { %v464_v3 = vmul.f32 0.25, %v459_v39  ;;  %v467_v40 = vsel %vm208_vm5, %v465_v38, -inf  ;;  %2683 = vmatprep.subr.bf16.mxu1 %v2984_v9 }
 0x3e1   :  { %v2652_v41 = vpop.f32.mrf.mxu1  ;;  %468 = vmax.xlane.f32.xlu0 %v467_v40 }
 0x3e2   :  { %v466_v42 = vadd.f32 %v464_v3, %v3235_v11 }
 0x3e3   :  { %v582_v43 = vpop.f32.mrf.mxu1 }
 0x3e4   :  { %v589_v44 = vmul.f32 0.25, %v582_v43  ;;  %v470_v45 = vsel %vm208_vm5, %v466_v42, -inf }
 0x3e5   :  { %v2663_v48 = vpop.f32.mrf.mxu1  ;;  %471 = vmax.xlane.f32.xlu1 %v470_v45 }
 0x3e6   :  { %v591_v49 = vadd.f32 %v589_v44, %v3231_v37 }
 0x3e7   :  { %v585_v52 = vpop.f32.mrf.mxu1 }
 0x3e8   :  { %v590_v53 = vmul.f32 0.25, %v585_v52  ;;  %v593_v54 = vsel %vm208_vm5, %v591_v49, -inf }
 0x3e9   :  { %v2664_v55 = vpop.f32.mrf.mxu1  ;;  %594 = vmax.xlane.f32.xlu0 %v593_v54 }
 0x3ea   :  { %v592_v56 = vadd.f32 %v590_v53, %v3235_v11  ;;  %v2350_v55 = vld [vmem:[%s3723_s9] ss:$0 sm:$0xff] }
 0x3ec   :  { %v596_v57 = vsel %vm208_vm5, %v592_v56, -inf }
 0x3ed   :  { %597 = vmax.xlane.f32.xlu0 %v596_v57 }
 0x46a   :  { %v469_v58 = vpop.xlane.xlu0 %468 }
 0x46b   :  { %v473_v59 = vsub.f32 %v465_v38, %v469_v58 }
 0x46d   :  { %v475_v61 = vmul.f32 1.442695, %v473_v59 }
 0x46e   :  { %v472_v62 = vpop.xlane.xlu1 %471 }
 0x46f   :  { %2913 = vpow2.f32 %v475_v61  ;;  %v474_v63 = vsub.f32 %v466_v42, %v472_v62 }
 0x471   :  { %v477_v0 = vmul.f32 1.442695, %v474_v63 }
 0x472   :  { %v595_v1 = vpop.xlane.xlu0 %594 }
 0x473   :  { %2915 = vpow2.f32 %v477_v0  ;;  %v599_v2 = vsub.f32 %v591_v49, %v595_v1 }
 0x475   :  { %v601_v4 = vmul.f32 1.442695, %v599_v2 }
 0x476   :  { %v598_v5 = vpop.xlane.xlu0 %597 }
 0x477   :  { %2917 = vpow2.f32 %v601_v4  ;;  %v600_v7 = vsub.f32 %v592_v56, %v598_v5 }
 0x479   :  { %v603_v6 = vmul.f32 1.442695, %v600_v7 }
 0x47b   :  { %2919 = vpow2.f32 %v603_v6 }
 0x47c   :  { %v2914_v10 = vpop.eup %2913 }
 0x47d   :  { %v479_v12 = vsel %vm208_vm5, %v2914_v10, 0.0 }
 0x47e   :  { %480 = vadd.xlane.f32.xlu1 %v479_v12 }
 0x480   :  { %v2916_v13 = vpop.eup %2915 }
 0x481   :  { %v482_v14 = vsel %vm208_vm5, %v2916_v13, 0.0 }
 0x482   :  { %483 = vadd.xlane.f32.xlu0 %v482_v14 }
 0x484   :  { %v2918_v15 = vpop.eup %2917 }
 0x485   :  { %v605_v16 = vsel %vm208_vm5, %v2918_v15, 0.0 }
 0x486   :  { %606 = vadd.xlane.f32.xlu1 %v605_v16 }
 0x488   :  { %v2920_v18 = vpop.eup %2919 }
 0x489   :  { %v608_v19 = vsel %vm208_vm5, %v2920_v18, 0.0 }
 0x48a   :  { %609 = vadd.xlane.f32.xlu0 %v608_v19  ;;  %v2851_v19 = vld [vmem:[%s3726_s12 + $0x18] sm:$0xff]  }
 0x497   :  { %490 = vrot.lane.b32.xlu1 %v3196_v60, %s2994_s26 }
 0x4a0   :  { %616 = vrot.lane.b32.xlu0 %v3196_v60, %s2995_s27 }
 0x507   :  { %v481_v20 = vpop.xlane.xlu1 %480 }
 0x508   :  { %2921 = vrcp.f32 %v481_v20  ;;  %v2852_v20 = vld [vmem:[%s3726_s12 + $0x10] sm:$0xff]  }
 0x50b   :  { %v484_v21 = vpop.xlane.xlu0 %483 }
 0x50c   :  { %2923 = vrcp.f32 %v484_v21 }
 0x50f   :  { %v607_v22 = vpop.xlane.xlu1 %606 }
 0x510   :  { %2925 = vrcp.f32 %v607_v22 }
 0x513   :  { %v491_v23 = vpop.permute.xlu1 %490  ;;  %v610_v24 = vpop.xlane.xlu0 %609 }
 0x514   :  { %2927 = vrcp.f32 %v610_v24  ;;  %2654 = vmatpush3.bf16.msra.mxu0 %v491_v23 }
 0x515   :  { %2665 = vmatprep.subr.bf16.mxu0 %v2984_v9  ;;  %v2922_v25 = vpop.eup %2921 }
 0x516   :  { %v487_v27 = vmul.f32 %v2922_v25, %v2914_v10 }
 0x517   :  { %v617_v30 = vpop.permute.xlu0 %616 }
 0x519   :  { %v2924_v26 = vpop.eup %2923 }
 0x51a   :  { %v488_v28 = vmul.f32 %v2924_v26, %v2916_v13 }
 0x51c   :  { %v489_v29 = vpack.c.bf16 %v488_v28, %v487_v27  ;;  %v2351_v28 = vld [vmem:[%s3724_s10] ss:$0 sm:$0xff] }
 0x51d   :  { %v2926_v60 = vpop.eup %2925 }
 0x51e   :  { %2656 = vmatmul.mubr.msk.bf16.vlgmr.msra.gmra.mxu0 %vm208_vm5, %v489_v29  ;;  %v613_v32 = vmul.f32 %v2926_v60, %v2918_v15 }
 0x51f   :  { %2666 = vmatpush3.bf16.msra.mxu0 %v617_v30  ;;  %2667 = vmatprep.mubr.msk.bf16.mxu0 %vm2985_vm0, %v2984_v9  ;;  %v2352_v30 = vld [vmem:[%s3725_s11] ss:$0 sm:$0xff] }
 0x520   :  { %2677 = vmatprep.subr.bf16.mxu0 %v2984_v9 }
 0x521   :  { %v2928_v31 = vpop.eup %2927 }
 0x522   :  { %v614_v33 = vmul.f32 %v2928_v31, %v2920_v18  ;;  %v2850_v18 = vld [vmem:[%s3726_s12 + $0x20] sm:$0xff]  }
 0x524   :  { %v615_v17 = vpack.c.bf16 %v614_v33, %v613_v32  ;;  %v2853_v32 = vld [vmem:[%s3726_s12 + $0x8] sm:$0xff]  }
 0x526   :  { %2668 = vmatmul.mubr.msk.bf16.vlgmr.msra.gmra.mxu0 %vm208_vm5, %v615_v17 }
 0x527   :  { %2679 = vmatprep.mubr.msk.bf16.mxu0 %vm2985_vm0, %v2984_v9  ;;  %2678 = vmatpush3.bf16.msra.mxu0 %v2847_v34  ;;  %v164_v34 = vadd.s32 1, %v3118_v8 }
 0x529   :  { %vm166_vm2 = vcmp.le.s32.totalorder %v164_v34, 7 }
 0x5de   :  { %v530_v36 = vpop.f32.mrf.mxu0 }
 0x5e0   :  { %v2657_v38 = vpop.f32.mrf.mxu0 }
 0x5e2   :  { %v533_v39 = vpop.f32.mrf.mxu0 }
 0x5e3   :  { %v537_v3 = vpack.c.bf16 %v533_v39, %v530_v36  ;;  %v2854_v36 = vld [vmem:[%s3726_s12] sm:$0xff]  }
 0x5e4   :  { %v2658_v40 = vpop.f32.mrf.mxu0 }
 0x5e5   :  { %2680 = vmatmul.mubr.msk.bf16.vlgmr.msra.gmra.mxu0 %vm208_vm5, %v537_v3  ;;  %v2855_v40 = vld [vmem:[%s3728_s14 + $0x78] sm:$0xff]  }
 0x5e6   :  { %v656_v41 = vpop.f32.mrf.mxu0  ;;  %2541 = vmatprep.subr.bf16.mxu0 %v2855_v40 }
 0x5e8   :  { %v2669_v42 = vpop.f32.mrf.mxu0 }
 0x5ea   :  { %v659_v43 = vpop.f32.mrf.mxu0 }
 0x5eb   :  { %v663_v44 = vpack.c.bf16 %v659_v43, %v656_v41  ;;  %v2856_v41 = vld [vmem:[%s3728_s14 + $0x38] sm:$0xff]   ;;  %v3325_v43 = vsel %vm166_vm2, 1.0, %v2984_v9 }
 0x5ec   :  { %v2670_v45 = vpop.f32.mrf.mxu0  ;;  %2542 = vmatpush3.bf16.msra.mxu0 %v2856_v41 }
 0x5ed   :  { %2674 = vmatmul.mubr.msk.bf16.vlgmr.msra.gmra.mxu1 %vm208_vm5, %v663_v44 }
 0x5ee   :  { %2695 = vmatprep.mubr.msk.bf16.mxu1 %vm2985_vm0, %v2984_v9 }
 0x6a5   :  { %v757_v48 = vpop.f32.mrf.mxu0 }
 0x6a7   :  { %v2681_v49 = vpop.f32.mrf.mxu0 }
 0x6a9   :  { %v760_v52 = vpop.f32.mrf.mxu0 }
 0x6ab   :  { %v2682_v53 = vpop.f32.mrf.mxu0 }
 0x6ac   :  { %v2859_v53 = vld [vmem:[%s3728_s14 + $0x30] sm:$0xff]  }
 0x6ad   :  { %v707_v54 = vpop.f32.mrf.mxu1 }
 0x6ae   :  { %v758_v56 = vadd.f32 %v757_v48, %v707_v54  ;;  %v2858_v48 = vld [vmem:[%s3728_s14 + $0x70] sm:$0xff]  }
 0x6af   :  { %v2675_v57 = vpop.f32.mrf.mxu1  ;;  %2543 = vmatprep.subr.bf16.mxu0 %v2858_v48 }
 0x6b0   :  { %v771_v58 = vadd.f32 %v2350_v55, %v758_v56  ;;  %v2861_v56 = vld [vmem:[%s3728_s14 + $0x68] sm:$0xff]   ;;  %2544 = vmatpush3.bf16.msra.mxu0 %v2859_v53 }
 0x6b1   :  { %v710_v59 = vpop.f32.mrf.mxu1  ;;  %2545 = vmatprep.subr.bf16.mxu0 %v2861_v56 }
 0x6b2   :  { %v761_v61 = vadd.f32 %v760_v52, %v710_v59  ;;  %v773_v62 = vadd.f32 %v771_v58, %v3183_v50  ;;  %v2862_v58 = vld [vmem:[%s3728_s14 + $0x28] sm:$0xff]   ;;  %v2864_v59 = vld [vmem:[%s3728_s14 + $0x60] sm:$0xff]  }
 0x6b3   :  { %v2676_v63 = vpop.f32.mrf.mxu1 }
 0x6b4   :  { %v772_v0 = vadd.f32 %v2350_v55, %v761_v61  ;;  %v777_v1 = vsel %vm269_vm8, %v773_v62, 0.0  ;;  %2546 = vmatpush3.bf16.msra.mxu0 %v2862_v58  ;;  %v2865_v61 = vld [vmem:[%s3728_s14 + $0x20] sm:$0xff]  }
 0x6b5   :  { %778 = vadd.xlane.f32.xlu1 %v777_v1  ;;  %2547 = vmatprep.subr.bf16.mxu0 %v2864_v59 }
 0x6b6   :  { %v774_v2 = vadd.f32 %v772_v0, %v3186_v51  ;;  %v2849_v51 = vld [vmem:[%s3726_s12 + $0x28] sm:$0xff]  }
 0x6b7   :  { %2684 = vmatpush3.bf16.msra.mxu1 %v2849_v51 }
 0x6b8   :  { %v780_v4 = vsel %vm269_vm8, %v774_v2, 0.0  ;;  %2685 = vmatprep.subr.bf16.mxu1 %v2984_v9  ;;  %2548 = vmatpush3.bf16.msra.mxu0 %v2865_v61 }
 0x6b9   :  { %781 = vadd.xlane.f32.xlu0 %v780_v4 }
 0x6bb   :  { %2686 = vmatpush3.bf16.msra.mxu1 %v2850_v18  ;;  %v2857_v18 = vld [vmem:[%s3728_s14 + $0xb8] sm:$0xff]  }
 0x6bc   :  { %2687 = vmatprep.subr.bf16.mxu1 %v2984_v9 }
 0x6bf   :  { %2688 = vmatpush3.bf16.msra.mxu1 %v2851_v19 }
 0x6c0   :  { %2689 = vmatprep.subr.bf16.mxu1 %v2984_v9 }
 0x6c3   :  { %2690 = vmatpush3.bf16.msra.mxu1 %v2852_v20  ;;  %v2860_v20 = vld [vmem:[%s3728_s14 + $0xb0] sm:$0xff]  }
 0x6c4   :  { %2691 = vmatprep.subr.bf16.mxu1 %v2984_v9 }
 0x6c7   :  { %2692 = vmatpush3.bf16.msra.mxu1 %v2853_v32  ;;  %v2877_v32 = vld [vmem:[%s3728_s14] sm:$0xff]  }
 0x6c8   :  { %2693 = vmatprep.subr.bf16.mxu1 %v2984_v9 }
 0x6cb   :  { %2694 = vmatpush3.bf16.msra.mxu1 %v2854_v36 }
 0x6cc   :  { %2699 = vmatprep.subr.bf16.mxu1 %v2984_v9 }
 0x73e   :  { %v779_v5 = vpop.xlane.xlu1 %778 }
 0x73f   :  { %v784_v7 = vmul.f32 0.03125, %v779_v5 }
 0x741   :  { %v786_v6 = vsub.f32 %v773_v62, %v784_v7  ;;  %v153_v62 = vadd.s32 4294967295, %v3118_v8 }
 0x742   :  { %v782_v10 = vpop.xlane.xlu0 %781 }
 0x743   :  { %v785_v12 = vmul.f32 0.03125, %v782_v10  ;;  %v788_v13 = vmul.f32 %v786_v6, %v786_v6  ;;  %vm154_vm4 = vcmp.ge.s32.totalorder %v153_v62, 0 }
 0x745   :  { %v787_v14 = vsub.f32 %v774_v2, %v785_v12  ;;  %v790_v15 = vsel %vm269_vm8, %v788_v13, 0.0  ;;  %v3357_v2 = vsel %vm154_vm4, 1.0, %v2984_v9 }
 0x746   :  { %791 = vadd.xlane.f32.xlu1 %v790_v15 }
 0x747   :  { %v789_v50 = vmul.f32 %v787_v14, %v787_v14 }
 0x749   :  { %v793_v16 = vsel %vm269_vm8, %v789_v50, 0.0 }
 0x74a   :  { %794 = vadd.xlane.f32.xlu0 %v793_v16 }
 0x7cf   :  { %v792_v21 = vpop.xlane.xlu1 %791 }
 0x7d0   :  { %v796_v22 = vmul.f32 0.03125, %v792_v21  ;;  %v2863_v21 = vld [vmem:[%s3728_s14 + $0xa8] sm:$0xff]  }
 0x7d2   :  { %v798_v23 = vadd.f32 1e-05, %v796_v22  ;;  %v2866_v22 = vld [vmem:[%s3728_s14 + $0xa0] sm:$0xff]  }
 0x7d3   :  { %v795_v24 = vpop.xlane.xlu0 %794 }
 0x7d4   :  { %2929 = vrsqrt.f32 %v798_v23  ;;  %v797_v25 = vmul.f32 0.03125, %v795_v24  ;;  %v2867_v23 = vld [vmem:[%s3728_s14 + $0x58] sm:$0xff]  }
 0x7d5   :  { %v2868_v24 = vld [vmem:[%s3728_s14 + $0x18] sm:$0xff]   ;;  %2549 = vmatprep.subr.bf16.mxu0 %v2867_v23 }
 0x7d6   :  { %v799_v26 = vadd.f32 1e-05, %v797_v25  ;;  %v2869_v25 = vld [vmem:[%s3728_s14 + $0x98] sm:$0xff]   ;;  %2550 = vmatpush3.bf16.msra.mxu0 %v2868_v24 }
 0x7d8   :  { %2931 = vrsqrt.f32 %v799_v26  ;;  %v2870_v26 = vld [vmem:[%s3728_s14 + $0x50] sm:$0xff]  }
 0x7d9   :  { %2551 = vmatprep.subr.bf16.mxu0 %v2870_v26 }
 0x7e1   :  { %v2930_v27 = vpop.eup %2929 }
 0x7e2   :  { %v802_v29 = vmul.f32 %v2930_v27, %v786_v6  ;;  %v2871_v27 = vld [vmem:[%s3728_s14 + $0x10] sm:$0xff]  }
 0x7e3   :  { %2552 = vmatpush3.bf16.msra.mxu0 %v2871_v27 }
 0x7e4   :  { %v810_v60 = vmul.f32 %v2351_v28, %v802_v29  ;;  %v2873_v29 = vld [vmem:[%s3728_s14 + $0x48] sm:$0xff]  }
 0x7e5   :  { %v2932_v31 = vpop.eup %2931  ;;  %2553 = vmatprep.subr.bf16.mxu0 %v2873_v29 }
 0x7e6   :  { %v803_v33 = vmul.f32 %v2932_v31, %v787_v14  ;;  %v818_v17 = vadd.f32 %v2352_v30, %v810_v60  ;;  %v2875_v60 = vld [vmem:[%s3728_s14 + $0x88] sm:$0xff]   ;;  %v2876_v31 = vld [vmem:[%s3728_s14 + $0x40] sm:$0xff]  }
 0x7e8   :  { %v811_v35 = vmul.f32 %v2351_v28, %v803_v33  ;;  %v3310_v39 = vmul.f32 %v3179_v47, %v818_v17  ;;  %v2872_v28 = vld [vmem:[%s3728_s14 + $0x90] sm:$0xff]   ;;  %v2878_v33 = vld [vmem:[%s3728_s14 + $0x80] sm:$0xff]  }
 0x7e9   :  { %v2353_v17 = vld [vmem:[%s3744_s3] ss:$0 sm:$0xff] }
 0x7ea   :  { %v819_v38 = vadd.f32 %v2352_v30, %v811_v35  ;;  %v849_v44 = vrot.slane %v3310_v39, 1  ;;  %v838_v63 = vrot.slane %v3310_v39, 7  ;;  %v2874_v30 = vld [vmem:[%s3728_s14 + $0x8] sm:$0xff]  }
 0x7eb   :  { %2554 = vmatpush3.bf16.msra.mxu0 %v2874_v30 }
 0x7ec   :  { %v3313_v3 = vmul.f32 %v3177_v46, %v819_v38  ;;  %v843_v4 = vsel %vm837_vm6, 0.0, %v838_v63  ;;  %2555 = vmatprep.subr.bf16.mxu0 %v2876_v31  ;;  %v2880_v31 = vld [vmem:[%s3720_s6 + $0x10] sm:$0xff]  }
 0x7ed   :  { %v844_v10 = vmul.f32 %v3357_v2, %v843_v4 }
 0x7ee   :  { %v2822_v42 = vpack.i.bf16 %v3313_v3, %v3310_v39  ;;  %v850_v45 = vrot.slane %v3313_v3, 1  ;;  %v839_v0 = vrot.slane %v3313_v3, 7 }
 0x7ef   :  { %2556 = vmatpush3.bf16.msra.mxu0 %v2877_v32 }
 0x7f0   :  { %2823 = vrot.lane.b32.xlu1 %v2822_v42, %s2996_s28  ;;  %v851_v49 = vsel %vm848_vm3, %v849_v44, %v850_v45  ;;  %v854_v52 = vsel %vm848_vm3, %v850_v45, 0.0  ;;  %v840_v5 = vsel %vm837_vm6, %v838_v63, %v839_v0  ;;  %2719 = vmatprep.subr.bf16.mxu0 %v2984_v9 }
 0x7f1   :  { %v855_v54 = vmul.f32 %v3325_v43, %v851_v49  ;;  %v856_v55 = vmul.f32 %v3325_v43, %v854_v52  ;;  %v845_v8 = vmul.f32 %v3357_v2, %v840_v5  ;;  %v2361_v5 = vld [vmem:[%s3729_s15] ss:$0 sm:$0xff] }
 0x7f3   :  { %v2827_v57 = vpack.i.bf16 %v856_v55, %v855_v54 }
 0x7f5   :  { %2828 = vrot.lane.b32.xlu0 %v2827_v57, %s2994_s26 }
 0x862   :  { %v2824_v1 = vpop.permute.xlu1 %2823 }
 0x863   :  { %v2826_v7 = vunpack.i.h.bf16 %v2824_v1  ;;  %v2825_v6 = vunpack.i.l.bf16 %v2824_v1 }
 0x865   :  { %v873_v15 = vsel %vm269_vm8, %v844_v10, %v2825_v6  ;;  %v874_v50 = vsel %vm269_vm8, %v845_v8, %v2826_v7 }
 0x867   :  { %v2829_v12 = vpop.permute.xlu0 %2828 }
 0x868   :  { %v2831_v13 = vunpack.i.h.bf16 %v2829_v12  ;;  %v2830_v14 = vunpack.i.l.bf16 %v2829_v12 }
 0x86a   :  { %v876_v16 = vsel %vm875_vm7, %v873_v15, %v2830_v14  ;;  %v877_v51 = vsel %vm875_vm7, %v874_v50, %v2831_v13 }
 0x86b   :  { %v878_v19 = vpack.c.bf16 %v877_v51, %v876_v16 }
 0x86d   :  { %2696 = vmatmul.mubr.msk.bf16.vlgmr.msra.gmra.mxu1 %vm921_vm9, %v878_v19 }
 0x86e   :  { %2700 = vmatpush3.bf16.msra.mxu1 %v2857_v18  ;;  %2715 = vmatprep.mubr.msk.bf16.mxu1 %vm2985_vm0, %v2984_v9 }
 0x86f   :  { %2701 = vmatprep.subr.bf16.mxu1 %v2984_v9 }
 0x872   :  { %2702 = vmatpush3.bf16.msra.mxu1 %v2860_v20 }
 0x873   :  { %2703 = vmatprep.subr.bf16.mxu1 %v2984_v9 }
 0x876   :  { %2704 = vmatpush3.bf16.msra.mxu1 %v2863_v21 }
 0x877   :  { %2705 = vmatprep.subr.bf16.mxu1 %v2984_v9 }
 0x87a   :  { %2706 = vmatpush3.bf16.msra.mxu1 %v2866_v22 }
 0x87b   :  { %2707 = vmatprep.subr.bf16.mxu1 %v2984_v9 }
 0x87e   :  { %2708 = vmatpush3.bf16.msra.mxu1 %v2869_v25 }
 0x87f   :  { %2709 = vmatprep.subr.bf16.mxu1 %v2984_v9 }
 0x882   :  { %2710 = vmatpush3.bf16.msra.mxu1 %v2872_v28 }
 0x883   :  { %2711 = vmatprep.subr.bf16.mxu1 %v2984_v9 }
 0x886   :  { %2712 = vmatpush3.bf16.msra.mxu1 %v2875_v60 }
 0x887   :  { %2713 = vmatprep.subr.bf16.mxu1 %v2984_v9 }
 0x88a   :  { %2714 = vmatpush3.bf16.msra.mxu1 %v2878_v33 }
 0x88b   :  { %2739 = vmatprep.subr.bf16.mxu1 %v2984_v9 }
 0x92d   :  { %v959_v34 = vpop.f32.mrf.mxu1 }
 0x92e   :  { %v960_v35 = vadd.f32 %v2353_v17, %v959_v34 }
 0x92f   :  { %v2697_v36 = vpop.f32.mrf.mxu1 }
 0x930   :  { %v966_v38 = vmax.f32 %v960_v35, 0.0 }
 0x931   :  { %v962_v40 = vpop.f32.mrf.mxu1 }
 0x932   :  { %v1019_v41 = vrot.slane %v966_v38, 7  ;;  %v963_v42 = vadd.f32 %v2353_v17, %v962_v40  ;;  %v1029_v48 = vrot.slane %v966_v38, 1  ;;  %v2386_v40 = vld [vmem:[%s3730_s16] ss:$0 sm:$0xff] }
 0x933   :  { %v2698_v44 = vpop.f32.mrf.mxu1 }
 0x934   :  { %v967_v45 = vmax.f32 %v963_v42, 0.0  ;;  %v1024_v49 = vsel %vm837_vm6, 0.0, %v1019_v41 }
 0x935   :  { %v1025_v58 = vmul.f32 %v3357_v2, %v1024_v49 }
 0x936   :  { %v1020_v52 = vrot.slane %v967_v45, 7  ;;  %v1030_v53 = vrot.slane %v967_v45, 1  ;;  %v1038_v54 = vpack.c.bf16 %v967_v45, %v966_v38  ;;  %v2387_v45 = vld [vmem:[%s3731_s17] ss:$0 sm:$0xff] }
 0x938   :  { %v1021_v55 = vsel %vm837_vm6, %v1019_v41, %v1020_v52  ;;  %v1031_v56 = vsel %vm848_vm3, %v1029_v48, %v1030_v53  ;;  %v1034_v57 = vsel %vm848_vm3, %v1030_v53, 0.0  ;;  %1222 = vmatprep.mubr.bf16.mxu0 %v1038_v54 }
 0x939   :  { %v1036_v59 = vmul.f32 %v3325_v43, %v1034_v57  ;;  %v1026_v61 = vmul.f32 %v3357_v2, %v1021_v55  ;;  %v1035_v62 = vmul.f32 %v3325_v43, %v1031_v56 }
 0x93b   :  { %v1037_v63 = vpack.c.bf16 %v1026_v61, %v1025_v58  ;;  %v1039_v0 = vpack.c.bf16 %v1036_v59, %v1035_v62  ;;  %v2393_v58 = vld [vmem:[%s3721_s7 + $0x1] ss:$0 sm:$0xff] }
 0x93d   :  { %1223 = vmatmul.mubr.bf16.vlgmr.msra.gmra.mxu0 %v1037_v63  ;;  %2716 = vmatmul.mubr.bf16.vlgmr.msra.gmra.mxu1 %v1039_v0 }
 0x93e   :  { %2723 = vmatprep.mubr.msk.bf16.mxu0 %vm2985_vm0, %v2984_v9  ;;  %2741 = vmatprep.mubr.msk.bf16.mxu1 %vm2985_vm0, %v2984_v9 }
 0x9fd   :  { %v2557_v1 = vpop.f32.mrf.mxu0  ;;  %v1265_v4 = vpop.f32.mrf.mxu1 }
 0x9ff   :  { %v2558_v7 = vpop.f32.mrf.mxu0  ;;  %v2717_v6 = vpop.f32.mrf.mxu1 }
 0xa00   :  { %v2559_v10 = vadd.f32 %v2558_v7, %v2557_v1 }
 0xa01   :  { %v2560_v8 = vpop.f32.mrf.mxu0  ;;  %v1268_v12 = vpop.f32.mrf.mxu1 }
 0xa02   :  { %v1225_v13 = vadd.f32 %v2559_v10, %v2361_v5 }
 0xa03   :  { %v2561_v14 = vpop.f32.mrf.mxu0  ;;  %v2718_v15 = vpop.f32.mrf.mxu1 }
 0xa04   :  { %v2562_v50 = vadd.f32 %v2561_v14, %v2560_v8  ;;  %v1266_v16 = vadd.f32 %v1265_v4, %v1225_v13 }
 0xa06   :  { %v1228_v51 = vadd.f32 %v2562_v50, %v2361_v5  ;;  %v1272_v18 = vadd.f32 %v1266_v16, %v3310_v39 }
 0xa08   :  { %v1276_v19 = vsel %vm269_vm8, %v1272_v18, 0.0  ;;  %v1269_v20 = vadd.f32 %v1268_v12, %v1228_v51 }
 0xa09   :  { %1277 = vadd.xlane.f32.xlu1 %v1276_v19 }
 0xa0a   :  { %v1273_v21 = vadd.f32 %v1269_v20, %v3313_v3  ;;  %v2879_v3 = vld [vmem:[%s3720_s6 + $0x18] sm:$0xff]  }
 0xa0b   :  { %2720 = vmatpush3.bf16.msra.mxu0 %v2879_v3 }
 0xa0c   :  { %v1279_v22 = vsel %vm269_vm8, %v1273_v21, 0.0  ;;  %2721 = vmatprep.subr.bf16.mxu0 %v2984_v9 }
 0xa0d   :  { %1280 = vadd.xlane.f32.xlu0 %v1279_v22 }
 0xa0f   :  { %2722 = vmatpush3.bf16.msra.mxu0 %v2880_v31 }
 0xa10   :  { %2727 = vmatprep.subr.bf16.mxu0 %v2984_v9 }
 0xa92   :  { %v1278_v23 = vpop.xlane.xlu1 %1277 }
 0xa93   :  { %v1282_v24 = vmul.f32 0.03125, %v1278_v23 }
 0xa95   :  { %v1284_v25 = vsub.f32 %v1272_v18, %v1282_v24 }
 0xa96   :  { %v1281_v26 = vpop.xlane.xlu0 %1280 }
 0xa97   :  { %v1283_v27 = vmul.f32 0.03125, %v1281_v26  ;;  %v1286_v28 = vmul.f32 %v1284_v25, %v1284_v25 }
 0xa99   :  { %v1285_v29 = vsub.f32 %v1273_v21, %v1283_v27  ;;  %v1288_v30 = vsel %vm269_vm8, %v1286_v28, 0.0 }
 0xa9a   :  { %1289 = vadd.xlane.f32.xlu1 %v1288_v30 }
 0xa9b   :  { %v1287_v39 = vmul.f32 %v1285_v29, %v1285_v29 }
 0xa9d   :  { %v1291_v60 = vsel %vm269_vm8, %v1287_v39, 0.0 }
 0xa9e   :  { %1292 = vadd.xlane.f32.xlu0 %v1291_v60 }
 0xb23   :  { %v1290_v32 = vpop.xlane.xlu1 %1289 }
 0xb24   :  { %v1294_v33 = vmul.f32 0.03125, %v1290_v32 }
 0xb26   :  { %v1296_v17 = vadd.f32 1e-05, %v1294_v33 }
 0xb27   :  { %v1293_v34 = vpop.xlane.xlu0 %1292 }
 0xb28   :  { %2933 = vrsqrt.f32 %v1296_v17  ;;  %v1295_v35 = vmul.f32 0.03125, %v1293_v34 }
 0xb2a   :  { %v1297_v36 = vadd.f32 1e-05, %v1295_v35 }
 0xb2c   :  { %2935 = vrsqrt.f32 %v1297_v36 }
 0xb35   :  { %v2934_v38 = vpop.eup %2933 }
 0xb36   :  { %v1300_v41 = vmul.f32 %v2934_v38, %v1284_v25 }
 0xb38   :  { %v1308_v42 = vmul.f32 %v2386_v40, %v1300_v41 }
 0xb39   :  { %v2936_v44 = vpop.eup %2935 }
 0xb3a   :  { %v1301_v48 = vmul.f32 %v2936_v44, %v1285_v29  ;;  %v1316_v52 = vadd.f32 %v2387_v45, %v1308_v42 }
 0xb3c   :  { %v1309_v49 = vmul.f32 %v2386_v40, %v1301_v48  ;;  %v3466_v54 = vmul.f32 %v3179_v47, %v1316_v52 }
 0xb3e   :  { %v1317_v53 = vadd.f32 %v2387_v45, %v1309_v49 }
 0xb40   :  { %v3469_v55 = vmul.f32 %v3177_v46, %v1317_v53 }
 0xb42   :  { %v1320_v56 = vpack.c.bf16 %v3469_v55, %v3466_v54 }
 0xb44   :  { %2724 = vmatmul.mubr.msk.bf16.vlgmr.msra.gmra.mxu0 %vm269_vm8, %v1320_v56 }
 0xb45   :  { %2729 = vmatprep.mubr.msk.bf16.mxu0 %vm2985_vm0, %v2984_v9 }
 0xc04   :  { %v1383_v57 = vpop.f32.mrf.mxu0 }
 0xc05   :  { %v1384_v62 = vadd.f32 %v2393_v58, %v1383_v57 }
 0xc06   :  { %v2725_v59 = vpop.f32.mrf.mxu0 }
 0xc08   :  { %v1386_v61 = vpop.f32.mrf.mxu0 }
 0xc09   :  { %v1387_v63 = vadd.f32 %v2393_v58, %v1386_v61 }
 0xc0a   :  { %v2726_v0 = vpop.f32.mrf.mxu0 }
 0xc0b   :  { %v3479_v1 = vpack.c.bf16 %v1387_v63, %v1384_v62 }
 0xc0d   :  { %1523 = vrot.lane.b32.xlu0 %v3479_v1, %s2987_s2  ;;  %1397 = vrot.lane.b32.xlu1 %v3479_v1, %s2988_s23 }
 0xc11   :  { %1521 = vrot.lane.b32.xlu1 %v3479_v1, %s2989_s24 }
 0xc7f   :  { %v1524_v4 = vpop.permute.xlu0 %1523  ;;  %v1398_v5 = vpop.permute.xlu1 %1397 }
 0xc80   :  { %v1529_v7 = vsel %vm208_vm5, %v1524_v4, 0  ;;  %v1403_v6 = vsel %vm208_vm5, %v1398_v5, 0 }
 0xc81   :  { %2728 = vmatpush3.bf16.xpose.msra.mxu0 %v1403_v6  ;;  %2740 = vmatpush3.bf16.xpose.msra.mxu1 %v1529_v7 }
 0xc82   :  { %2733 = vmatprep.subr.bf16.mxu0 %v2984_v9  ;;  %2751 = vmatprep.subr.bf16.mxu1 %v2984_v9 }
 0xc83   :  { %v1522_v10 = vpop.permute.xlu1 %1521 }
 0xc88   :  { %2730 = vmatmul.mubr.msk.bf16.vlgmr.msra.gmra.mxu0 %vm208_vm5, %v3479_v1  ;;  %2742 = vmatmul.mubr.msk.bf16.vlgmr.msra.gmra.mxu1 %vm208_vm5, %v1522_v10  ;;  %v2881_v10 = vld [vmem:[%s3722_s8 + $0x10] sm:$0xff]  }
 0xc89   :  { %2735 = vmatprep.mubr.msk.bf16.mxu0 %vm2985_vm0, %v2984_v9  ;;  %2753 = vmatprep.mubr.msk.bf16.mxu1 %vm2985_vm0, %v2984_v9 }
 0xd48   :  { %v1439_v8 = vpop.f32.mrf.mxu0  ;;  %v1565_v12 = vpop.f32.mrf.mxu1 }
 0xd49   :  { %v1446_v13 = vmul.f32 0.25, %v1439_v8  ;;  %v1572_v18 = vmul.f32 0.25, %v1565_v12  ;;  %v2882_v8 = vld [vmem:[%s3722_s8 + $0x18] sm:$0xff]  }
 0xd4a   :  { %v2731_v14 = vpop.f32.mrf.mxu0  ;;  %v2743_v15 = vpop.f32.mrf.mxu1  ;;  %2752 = vmatpush3.bf16.msra.mxu1 %v2882_v8 }
 0xd4b   :  { %v1448_v50 = vadd.f32 %v1446_v13, %v3231_v37  ;;  %v1574_v28 = vadd.f32 %v1572_v18, %v3231_v37  ;;  %2763 = vmatprep.subr.bf16.mxu1 %v2984_v9 }
 0xd4c   :  { %v1442_v16 = vpop.f32.mrf.mxu0  ;;  %v1568_v51 = vpop.f32.mrf.mxu1 }
 0xd4d   :  { %v1447_v19 = vmul.f32 0.25, %v1442_v16  ;;  %v1573_v20 = vmul.f32 0.25, %v1568_v51  ;;  %v1450_v21 = vsel %vm208_vm5, %v1448_v50, -inf  ;;  %v1576_v29 = vsel %vm208_vm5, %v1574_v28, -inf }
 0xd4e   :  { %v2744_v22 = vpop.f32.mrf.mxu1  ;;  %1451 = vmax.xlane.f32.xlu1 %v1450_v21  ;;  %v2732_v23 = vpop.f32.mrf.mxu0 }
 0xd4f   :  { %v1575_v24 = vadd.f32 %v1573_v20, %v3235_v11  ;;  %v1449_v25 = vadd.f32 %v1447_v19, %v3235_v11 }
 0xd51   :  { %v1579_v26 = vsel %vm208_vm5, %v1575_v24, -inf  ;;  %v1453_v27 = vsel %vm208_vm5, %v1449_v25, -inf }
 0xd52   :  { %1580 = vmax.xlane.f32.xlu1 %v1579_v26  ;;  %1454 = vmax.xlane.f32.xlu0 %v1453_v27  ;;  %v2410_v26 = vld [vmem:[%s3723_s9 + $0x1] ss:$0 sm:$0xff] }
 0xd56   :  { %1577 = vmax.xlane.f32.xlu0 %v1576_v29 }
 0xdd7   :  { %v1452_v30 = vpop.xlane.xlu1 %1451 }
 0xdd8   :  { %v1456_v39 = vsub.f32 %v1448_v50, %v1452_v30 }
 0xdda   :  { %v1458_v60 = vmul.f32 1.442695, %v1456_v39 }
 0xddb   :  { %v1581_v3 = vpop.xlane.xlu1 %1580  ;;  %v1455_v31 = vpop.xlane.xlu0 %1454 }
 0xddc   :  { %2937 = vpow2.f32 %v1458_v60  ;;  %v1583_v32 = vsub.f32 %v1575_v24, %v1581_v3  ;;  %v1457_v33 = vsub.f32 %v1449_v25, %v1455_v31 }
 0xdde   :  { %v1460_v11 = vmul.f32 1.442695, %v1457_v33  ;;  %v1586_v17 = vmul.f32 1.442695, %v1583_v32 }
 0xddf   :  { %v1578_v34 = vpop.xlane.xlu0 %1577 }
 0xde0   :  { %v1582_v35 = vsub.f32 %v1574_v28, %v1578_v34  ;;  %2939 = vpow2.f32 %v1460_v11 }
 0xde1   :  { %2941 = vpow2.f32 %v1586_v17 }
 0xde2   :  { %v1584_v36 = vmul.f32 1.442695, %v1582_v35 }
 0xde4   :  { %2943 = vpow2.f32 %v1584_v36 }
 0xde9   :  { %v2938_v37 = vpop.eup %2937 }
 0xdea   :  { %v1462_v38 = vsel %vm208_vm5, %v2938_v37, 0.0 }
 0xdeb   :  { %1463 = vadd.xlane.f32.xlu0 %v1462_v38 }
 0xded   :  { %v2940_v40 = vpop.eup %2939 }
 0xdee   :  { %v1465_v41 = vsel %vm208_vm5, %v2940_v40, 0.0  ;;  %v2942_v42 = vpop.eup %2941 }
 0xdef   :  { %1466 = vadd.xlane.f32.xlu1 %v1465_v41  ;;  %v1591_v48 = vsel %vm208_vm5, %v2942_v42, 0.0 }
 0xdf1   :  { %v2944_v44 = vpop.eup %2943 }
 0xdf2   :  { %v1588_v45 = vsel %vm208_vm5, %v2944_v44, 0.0 }
 0xdf3   :  { %1589 = vadd.xlane.f32.xlu0 %v1588_v45  ;;  %1592 = vadd.xlane.f32.xlu1 %v1591_v48  ;;  %v2885_v45 = vld [vmem:[%s3726_s12 + $0x48] sm:$0xff]   ;;  %v2886_v48 = vld [vmem:[%s3726_s12 + $0x40] sm:$0xff]  }
 0xe04   :  { %1599 = vrot.lane.b32.xlu1 %v3479_v1, %s2995_s27  ;;  %s2997_s27 = smov [#allocation3]  }
 0xe05   :  { %s2314_s9 = sshll.u32 %s2997_s27, 4  ;;  %s2315_s9 = int_to_ptr.vmem [resolvable:$true] %s2314_s9 }
 0xe06   :  { %p2966_p1 = scmp.lt.s32.totalorder %s2315_s9, %s2315_s9 }
 0xe09   :  { %1473 = vrot.lane.b32.xlu0 %v3479_v1, %s2994_s26 }
 0xe74   :  { %v1464_v49 = vpop.xlane.xlu0 %1463 }
 0xe75   :  { %2945 = vrcp.f32 %v1464_v49 }
 0xe78   :  { %v1467_v52 = vpop.xlane.xlu1 %1466 }
 0xe79   :  { %2947 = vrcp.f32 %v1467_v52 }
 0xe7c   :  { %v1590_v53 = vpop.xlane.xlu0 %1589  ;;  %v1593_v56 = vpop.xlane.xlu1 %1592 }
 0xe7d   :  { %2949 = vrcp.f32 %v1590_v53 }
 0xe7e   :  { %2951 = vrcp.f32 %v1593_v56 }
 0xe80   :  { %v1474_v57 = vpop.permute.xlu0 %1473  ;;  %v1600_v1 = vpop.permute.xlu1 %1599 }
 0xe81   :  { %2734 = vmatpush3.bf16.msra.mxu0 %v1474_v57 }
 0xe82   :  { %2745 = vmatprep.subr.bf16.mxu0 %v2984_v9  ;;  %v2946_v58 = vpop.eup %2945 }
 0xe83   :  { %v1470_v61 = vmul.f32 %v2946_v58, %v2938_v37 }
 0xe86   :  { %v2948_v59 = vpop.eup %2947 }
 0xe87   :  { %v1471_v62 = vmul.f32 %v2948_v59, %v2940_v40 }
 0xe89   :  { %v1472_v0 = vpack.c.bf16 %v1471_v62, %v1470_v61  ;;  %v2413_v61 = vld [vmem:[%s3724_s10 + $0x1] ss:$0 sm:$0xff] }
 0xe8a   :  { %v2950_v63 = vpop.eup %2949 }
 0xe8b   :  { %v2952_v4 = vpop.eup %2951  ;;  %2736 = vmatmul.mubr.msk.bf16.vlgmr.msra.gmra.mxu0 %vm208_vm5, %v1472_v0  ;;  %v1596_v5 = vmul.f32 %v2950_v63, %v2944_v44  ;;  %v2884_v44 = vld [vmem:[%s3726_s12 + $0x50] sm:$0xff]   ;;  %v2414_v63 = vld [vmem:[%s3725_s11 + $0x1] ss:$0 sm:$0xff] }
 0xe8c   :  { %2746 = vmatpush3.bf16.msra.mxu0 %v1600_v1  ;;  %2747 = vmatprep.mubr.msk.bf16.mxu0 %vm2985_vm0, %v2984_v9  ;;  %v1597_v7 = vmul.f32 %v2952_v4, %v2942_v42  ;;  %v2887_v1 = vld [vmem:[%s3726_s12 + $0x38] sm:$0xff]  }
 0xe8d   :  { %2757 = vmatprep.subr.bf16.mxu0 %v2984_v9 }
 0xe8e   :  { %v1598_v6 = vpack.c.bf16 %v1597_v7, %v1596_v5 }
 0xe93   :  { %2748 = vmatmul.mubr.msk.bf16.vlgmr.msra.gmra.mxu0 %vm208_vm5, %v1598_v6 }
 0xe94   :  { %2759 = vmatprep.mubr.msk.bf16.mxu0 %vm2985_vm0, %v2984_v9  ;;  %2758 = vmatpush3.bf16.msra.mxu0 %v2881_v10  ;;  %v2888_v10 = vld [vmem:[%s3726_s12 + $0x30] sm:$0xff]  }
 0xf4b   :  { %v1513_v12 = vpop.f32.mrf.mxu0 }
 0xf4d   :  { %v2737_v13 = vpop.f32.mrf.mxu0 }
 0xf4f   :  { %v1516_v14 = vpop.f32.mrf.mxu0 }
 0xf50   :  { %v1520_v15 = vpack.c.bf16 %v1516_v14, %v1513_v12  ;;  %v2889_v14 = vld [vmem:[%s3728_s14 + $0x138] sm:$0xff]  }
 0xf51   :  { %v2738_v50 = vpop.f32.mrf.mxu0  ;;  %2594 = vmatprep.subr.bf16.mxu0 %v2889_v14 }
 0xf52   :  { %2760 = vmatmul.mubr.msk.bf16.vlgmr.msra.gmra.mxu0 %vm208_vm5, %v1520_v15  ;;  %v2890_v15 = vld [vmem:[%s3728_s14 + $0xf8] sm:$0xff]  }
 0xf53   :  { %v1639_v16 = vpop.f32.mrf.mxu0  ;;  %2595 = vmatpush3.bf16.msra.mxu0 %v2890_v15 }
 0xf55   :  { %v2749_v51 = vpop.f32.mrf.mxu0 }
 0xf57   :  { %v1642_v18 = vpop.f32.mrf.mxu0 }
 0xf58   :  { %v1646_v19 = vpack.c.bf16 %v1642_v18, %v1639_v16  ;;  %v2892_v18 = vld [vmem:[%s3728_s14 + $0x130] sm:$0xff]  }
 0xf59   :  { %v2750_v20 = vpop.f32.mrf.mxu0  ;;  %2596 = vmatprep.subr.bf16.mxu0 %v2892_v18 }
 0xf5a   :  { %2754 = vmatmul.mubr.msk.bf16.vlgmr.msra.gmra.mxu1 %vm208_vm5, %v1646_v19 }
 0xf5b   :  { %2775 = vmatprep.mubr.msk.bf16.mxu1 %vm2985_vm0, %v2984_v9 }
0x1012   :  { %v1740_v21 = vpop.f32.mrf.mxu0 }
0x1014   :  { %v2761_v22 = vpop.f32.mrf.mxu0 }
0x1016   :  { %v1743_v23 = vpop.f32.mrf.mxu0 }
0x1018   :  { %v2762_v24 = vpop.f32.mrf.mxu0 }
0x1019   :  { %v2895_v24 = vld [vmem:[%s3728_s14 + $0x128] sm:$0xff]  }
0x101a   :  { %v1690_v25 = vpop.f32.mrf.mxu1 }
0x101b   :  { %v1741_v27 = vadd.f32 %v1740_v21, %v1690_v25  ;;  %v2893_v21 = vld [vmem:[%s3728_s14 + $0xf0] sm:$0xff]  }
0x101c   :  { %v2755_v28 = vpop.f32.mrf.mxu1  ;;  %2597 = vmatpush3.bf16.msra.mxu0 %v2893_v21 }
0x101d   :  { %v1755_v29 = vadd.f32 %v2410_v26, %v1741_v27  ;;  %2598 = vmatprep.subr.bf16.mxu0 %v2895_v24  ;;  %v2898_v27 = vld [vmem:[%s3728_s14 + $0x120] sm:$0xff]  }
0x101e   :  { %v1693_v30 = vpop.f32.mrf.mxu1  ;;  %v2899_v28 = vld [vmem:[%s3728_s14 + $0xe0] sm:$0xff]  }
0x101f   :  { %v1744_v39 = vadd.f32 %v1743_v23, %v1693_v30  ;;  %v1757_v60 = vadd.f32 %v1755_v29, %v3466_v54 }
0x1020   :  { %v2756_v3 = vpop.f32.mrf.mxu1 }
0x1021   :  { %v1756_v31 = vadd.f32 %v2410_v26, %v1744_v39  ;;  %v1763_v32 = vsel %vm269_vm8, %v1757_v60, 0.0  ;;  %v2896_v26 = vld [vmem:[%s3728_s14 + $0xe8] sm:$0xff]  }
0x1022   :  { %1764 = vadd.xlane.f32.xlu1 %v1763_v32  ;;  %2599 = vmatpush3.bf16.msra.mxu0 %v2896_v26 }
0x1023   :  { %v1758_v33 = vadd.f32 %v1756_v31, %v3469_v55  ;;  %v2883_v55 = vld [vmem:[%s3726_s12 + $0x58] sm:$0xff]   ;;  %2600 = vmatprep.subr.bf16.mxu0 %v2898_v27 }
0x1024   :  { %2764 = vmatpush3.bf16.msra.mxu1 %v2883_v55  ;;  %v2897_v55 = vld [vmem:[%s3728_s14 + $0x168] sm:$0xff]  }
0x1025   :  { %v1766_v11 = vsel %vm269_vm8, %v1758_v33, 0.0  ;;  %2765 = vmatprep.subr.bf16.mxu1 %v2984_v9 }
0x1026   :  { %1767 = vadd.xlane.f32.xlu0 %v1766_v11  ;;  %2601 = vmatpush3.bf16.msra.mxu0 %v2899_v28 }
0x1028   :  { %2766 = vmatpush3.bf16.msra.mxu1 %v2884_v44  ;;  %v2900_v44 = vld [vmem:[%s3728_s14 + $0x160] sm:$0xff]  }
0x1029   :  { %2767 = vmatprep.subr.bf16.mxu1 %v2984_v9 }
0x102c   :  { %2768 = vmatpush3.bf16.msra.mxu1 %v2885_v45  ;;  %v2901_v45 = vld [vmem:[%s3728_s14 + $0x118] sm:$0xff]  }
0x102d   :  { %2769 = vmatprep.subr.bf16.mxu1 %v2984_v9  ;;  %2602 = vmatprep.subr.bf16.mxu0 %v2901_v45 }
0x1030   :  { %2770 = vmatpush3.bf16.msra.mxu1 %v2886_v48  ;;  %v2902_v48 = vld [vmem:[%s3728_s14 + $0xd8] sm:$0xff]  }
0x1031   :  { %2771 = vmatprep.subr.bf16.mxu1 %v2984_v9  ;;  %2603 = vmatpush3.bf16.msra.mxu0 %v2902_v48 }
0x1034   :  { %2772 = vmatpush3.bf16.msra.mxu1 %v2887_v1 }
0x1035   :  { %2773 = vmatprep.subr.bf16.mxu1 %v2984_v9 }
0x1038   :  { %2774 = vmatpush3.bf16.msra.mxu1 %v2888_v10 }
0x1039   :  { %2779 = vmatprep.subr.bf16.mxu1 %v2984_v9 }
0x10ab   :  { %v1765_v17 = vpop.xlane.xlu1 %1764 }
0x10ac   :  { %v1769_v34 = vmul.f32 0.03125, %v1765_v17 }
0x10ae   :  { %v1771_v35 = vsub.f32 %v1757_v60, %v1769_v34 }
0x10af   :  { %v1768_v36 = vpop.xlane.xlu0 %1767 }
0x10b0   :  { %v1770_v37 = vmul.f32 0.03125, %v1768_v36  ;;  %v1773_v38 = vmul.f32 %v1771_v35, %v1771_v35 }
0x10b2   :  { %v1772_v40 = vsub.f32 %v1758_v33, %v1770_v37  ;;  %v1775_v41 = vsel %vm269_vm8, %v1773_v38, 0.0 }
0x10b3   :  { %1776 = vadd.xlane.f32.xlu0 %v1775_v41  ;;  %v2891_v41 = vld [vmem:[%s3728_s14 + $0x178] sm:$0xff]  }
0x10b4   :  { %v1774_v54 = vmul.f32 %v1772_v40, %v1772_v40 }
0x10b6   :  { %v1778_v42 = vsel %vm269_vm8, %v1774_v54, 0.0 }
0x10b7   :  { %1779 = vadd.xlane.f32.xlu1 %v1778_v42  ;;  %v2894_v42 = vld [vmem:[%s3728_s14 + $0x170] sm:$0xff]  }
0x113c   :  { %v1777_v49 = vpop.xlane.xlu0 %1776 }
0x113d   :  { %v1781_v52 = vmul.f32 0.03125, %v1777_v49  ;;  %v2903_v49 = vld [vmem:[%s3728_s14 + $0x158] sm:$0xff]  }
0x113f   :  { %v1783_v53 = vadd.f32 1e-05, %v1781_v52  ;;  %v2904_v52 = vld [vmem:[%s3728_s14 + $0x110] sm:$0xff]  }
0x1140   :  { %v1780_v56 = vpop.xlane.xlu1 %1779  ;;  %2604 = vmatprep.subr.bf16.mxu0 %v2904_v52 }
0x1141   :  { %2953 = vrsqrt.f32 %v1783_v53  ;;  %v1782_v57 = vmul.f32 0.03125, %v1780_v56  ;;  %v2905_v53 = vld [vmem:[%s3728_s14 + $0xd0] sm:$0xff]  }
0x1142   :  { %v2906_v56 = vld [vmem:[%s3728_s14 + $0x150] sm:$0xff]   ;;  %2605 = vmatpush3.bf16.msra.mxu0 %v2905_v53 }
0x1143   :  { %v1784_v58 = vadd.f32 1e-05, %v1782_v57  ;;  %v2907_v57 = vld [vmem:[%s3728_s14 + $0x108] sm:$0xff]  }
0x1144   :  { %2606 = vmatprep.subr.bf16.mxu0 %v2907_v57 }
0x1145   :  { %2955 = vrsqrt.f32 %v1784_v58  ;;  %v2908_v58 = vld [vmem:[%s3728_s14 + $0xc8] sm:$0xff]  }
0x1146   :  { %2607 = vmatpush3.bf16.msra.mxu0 %v2908_v58 }
0x114e   :  { %v2954_v59 = vpop.eup %2953 }
0x114f   :  { %v1787_v62 = vmul.f32 %v2954_v59, %v1771_v35  ;;  %v2909_v59 = vld [vmem:[%s3728_s14 + $0x148] sm:$0xff]  }
0x1151   :  { %v1795_v0 = vmul.f32 %v2413_v61, %v1787_v62  ;;  %v2911_v62 = vld [vmem:[%s3728_s14 + $0xc0] sm:$0xff]  }
0x1152   :  { %v2956_v4 = vpop.eup %2955 }
0x1153   :  { %v1788_v5 = vmul.f32 %v2956_v4, %v1772_v40  ;;  %v1803_v7 = vadd.f32 %v2414_v63, %v1795_v0  ;;  %v2428_v0 = vld [vmem:[%s3744_s3 + $0x1] ss:$0 sm:$0xff] }
0x1155   :  { %v1796_v6 = vmul.f32 %v2413_v61, %v1788_v5  ;;  %v3572_v12 = vmul.f32 %v3179_v47, %v1803_v7  ;;  %v2910_v61 = vld [vmem:[%s3728_s14 + $0x100] sm:$0xff]  }
0x1156   :  { %2608 = vmatprep.subr.bf16.mxu0 %v2910_v61 }
0x1157   :  { %v1804_v8 = vadd.f32 %v2414_v63, %v1796_v6  ;;  %v1834_v16 = vrot.slane %v3572_v12, 1  ;;  %v1824_v30 = vrot.slane %v3572_v12, 7  ;;  %v2912_v63 = vld [vmem:[%s3728_s14 + $0x140] sm:$0xff]   ;;  %2609 = vmatpush3.bf16.msra.mxu0 %v2911_v62 }
0x1158   :  { %v2512_v62 = vld [vmem:[%s3730_s16 + $0x1] ss:$0 sm:$0xff]  ;;  %s2961_s16 = scalar_lea.vmem %s2315_s9, 256 }
0x1159   :  { %v3575_v13 = vmul.f32 %v3177_v46, %v1804_v8  ;;  %v1829_v3 = vsel %vm837_vm6, 0.0, %v1824_v30  ;;  %p2962_p0 = scmp.ne.s32.totalorder %s2315_s9, %s2961_s16  ;;  %p2967_p2 = scmp.lt.s32.totalorder %s2961_s16, %s2961_s16 }
0x115a   :  { %v1830_v33 = vmul.f32 %v3357_v2, %v1829_v3 }
0x115b   :  { %v2832_v50 = vpack.i.bf16 %v3575_v13, %v3572_v12  ;;  %v1835_v51 = vrot.slane %v3575_v13, 1  ;;  %v1825_v29 = vrot.slane %v3575_v13, 7  ;;  %p2968_p3 = por %p2967_p2, %p2966_p1 }
0x115d   :  { %2833 = vrot.lane.b32.xlu0 %v2832_v50, %s2996_s28  ;;  %v1836_v19 = vsel %vm848_vm3, %v1834_v16, %v1835_v51  ;;  %v1839_v20 = vsel %vm848_vm3, %v1835_v51, 0.0  ;;  %v1826_v60 = vsel %vm837_vm6, %v1824_v30, %v1825_v29  ;;  %v2485_v30 = vld [vmem:[%s3729_s15 + $0x1] ss:$0 sm:$0xff]  ;;  %p2969_p4 = pnand %p2968_p3, %p2962_p0 }
0x115e   :  { %v1840_v22 = vmul.f32 %v3325_v43, %v1836_v19  ;;  %v1841_v23 = vmul.f32 %v3325_v43, %v1839_v20  ;;  %v1831_v11 = vmul.f32 %v3357_v2, %v1826_v60 }
0x1160   :  { %v2837_v25 = vpack.i.bf16 %v1841_v23, %v1840_v22 }
0x1162   :  { %2838 = vrot.lane.b32.xlu1 %v2837_v25, %s2994_s26 }
0x11cf   :  { %v2834_v39 = vpop.permute.xlu0 %2833 }
0x11d0   :  { %v2836_v31 = vunpack.i.h.bf16 %v2834_v39  ;;  %v2835_v32 = vunpack.i.l.bf16 %v2834_v39 }
0x11d2   :  { %v1858_v36 = vsel %vm269_vm8, %v1830_v33, %v2835_v32  ;;  %v1859_v37 = vsel %vm269_vm8, %v1831_v11, %v2836_v31 }
0x11d4   :  { %v2839_v17 = vpop.permute.xlu1 %2838 }
0x11d5   :  { %v2841_v34 = vunpack.i.h.bf16 %v2839_v17  ;;  %v2840_v35 = vunpack.i.l.bf16 %v2839_v17 }
0x11d7   :  { %v1860_v38 = vsel %vm875_vm7, %v1858_v36, %v2840_v35  ;;  %v1861_v40 = vsel %vm875_vm7, %v1859_v37, %v2841_v34 }
0x11d8   :  { %v1862_v54 = vpack.c.bf16 %v1861_v40, %v1860_v38 }
0x11da   :  { %2776 = vmatmul.mubr.msk.bf16.vlgmr.msra.gmra.mxu1 %vm921_vm9, %v1862_v54 }
0x11db   :  { %2780 = vmatpush3.bf16.msra.mxu1 %v2891_v41  ;;  %2795 = vmatprep.mubr.msk.bf16.mxu1 %vm2985_vm0, %v2984_v9 }
0x11dc   :  { %2781 = vmatprep.subr.bf16.mxu1 %v2984_v9 }
0x11df   :  { %2782 = vmatpush3.bf16.msra.mxu1 %v2894_v42 }
0x11e0   :  { %2783 = vmatprep.subr.bf16.mxu1 %v2984_v9 }
0x11e3   :  { %2784 = vmatpush3.bf16.msra.mxu1 %v2897_v55 }
0x11e4   :  { %2785 = vmatprep.subr.bf16.mxu1 %v2984_v9 }
0x11e7   :  { %2786 = vmatpush3.bf16.msra.mxu1 %v2900_v44 }
0x11e8   :  { %2787 = vmatprep.subr.bf16.mxu1 %v2984_v9 }
0x11eb   :  { %2788 = vmatpush3.bf16.msra.mxu1 %v2903_v49 }
0x11ec   :  { %2789 = vmatprep.subr.bf16.mxu1 %v2984_v9 }
0x11ef   :  { %2790 = vmatpush3.bf16.msra.mxu1 %v2906_v56 }
0x11f0   :  { %2791 = vmatprep.subr.bf16.mxu1 %v2984_v9 }
0x11f3   :  { %2792 = vmatpush3.bf16.msra.mxu1 %v2909_v59 }
0x11f4   :  { %2793 = vmatprep.subr.bf16.mxu1 %v2984_v9 }
0x11f7   :  { %2794 = vmatpush3.bf16.msra.mxu1 %v2912_v63 }
0x129a   :  { %v1942_v4 = vpop.f32.mrf.mxu1 }
0x129b   :  { %v1943_v1 = vadd.f32 %v2428_v0, %v1942_v4 }
0x129c   :  { %v2777_v5 = vpop.f32.mrf.mxu1 }
0x129d   :  { %v1949_v7 = vmax.f32 %v1943_v1, 0.0 }
0x129e   :  { %v1945_v9 = vpop.f32.mrf.mxu1 }
0x129f   :  { %v2004_v6 = vrot.slane %v1949_v7, 7  ;;  %v1946_v10 = vadd.f32 %v2428_v0, %v1945_v9  ;;  %v2014_v15 = vrot.slane %v1949_v7, 1  ;;  %v2513_v0 = vld [vmem:[%s3731_s17 + $0x1] ss:$0 sm:$0xff] }
0x12a0   :  { %v2778_v8 = vpop.f32.mrf.mxu1 }
0x12a1   :  { %v1950_v14 = vmax.f32 %v1946_v10, 0.0  ;;  %v2009_v50 = vsel %vm837_vm6, 0.0, %v2004_v6 }
0x12a2   :  { %v2010_v22 = vmul.f32 %v3357_v2, %v2009_v50 }
0x12a3   :  { %v2005_v16 = vrot.slane %v1950_v14, 7  ;;  %v2015_v51 = vrot.slane %v1950_v14, 1  ;;  %v2023_v18 = vpack.c.bf16 %v1950_v14, %v1949_v7 }
0x12a5   :  { %v2006_v19 = vsel %vm837_vm6, %v2004_v6, %v2005_v16  ;;  %v2016_v20 = vsel %vm848_vm3, %v2014_v15, %v2015_v51  ;;  %v2019_v21 = vsel %vm848_vm3, %v2015_v51, 0.0  ;;  %2207 = vmatprep.mubr.bf16.mxu0 %v2023_v18 }
0x12a6   :  { %v2021_v23 = vmul.f32 %v3325_v43, %v2019_v21  ;;  %v2011_v24 = vmul.f32 %v3357_v2, %v2006_v19  ;;  %v2020_v25 = vmul.f32 %v3325_v43, %v2016_v20 }
0x12a8   :  { %v2022_v26 = vpack.c.bf16 %v2011_v24, %v2010_v22  ;;  %v2024_v27 = vpack.c.bf16 %v2021_v23, %v2020_v25 }
0x12aa   :  { %2208 = vmatmul.mubr.bf16.vlgmr.msra.gmra.mxu0 %v2022_v26  ;;  %2796 = vmatmul.mubr.bf16.vlgmr.msra.gmra.mxu1 %v2024_v27 }
0x136a   :  { %v2610_v28 = vpop.f32.mrf.mxu0  ;;  %v2250_v29 = vpop.f32.mrf.mxu1 }
0x136c   :  { %v2611_v39 = vpop.f32.mrf.mxu0  ;;  %v2797_v60 = vpop.f32.mrf.mxu1 }
0x136d   :  { %v2612_v3 = vadd.f32 %v2611_v39, %v2610_v28 }
0x136e   :  { %v2613_v31 = vpop.f32.mrf.mxu0  ;;  %v2253_v32 = vpop.f32.mrf.mxu1 }
0x136f   :  { %v2210_v33 = vadd.f32 %v2612_v3, %v2485_v30 }
0x1370   :  { %v2614_v11 = vpop.f32.mrf.mxu0  ;;  %v2798_v2 = vpop.f32.mrf.mxu1 }
0x1371   :  { %v2615_v17 = vadd.f32 %v2614_v11, %v2613_v31  ;;  %v2251_v43 = vadd.f32 %v2250_v29, %v2210_v33 }
0x1373   :  { %v2213_v34 = vadd.f32 %v2615_v17, %v2485_v30  ;;  %v2257_v35 = vadd.f32 %v2251_v43, %v3572_v12 }
0x1375   :  { %v2263_v36 = vsel %vm269_vm8, %v2257_v35, 0.0  ;;  %v2254_v37 = vadd.f32 %v2253_v32, %v2213_v34 }
0x1376   :  { %2264 = vadd.xlane.f32.xlu1 %v2263_v36 }
0x1377   :  { %v2258_v38 = vadd.f32 %v2254_v37, %v3575_v13 }
0x1379   :  { %v2266_v40 = vsel %vm269_vm8, %v2258_v38, 0.0 }
0x137a   :  { %2267 = vadd.xlane.f32.xlu0 %v2266_v40 }
0x13ff   :  { %v2265_v41 = vpop.xlane.xlu1 %2264 }
0x1400   :  { %v2269_v54 = vmul.f32 0.03125, %v2265_v41 }
0x1402   :  { %v2271_v42 = vsub.f32 %v2257_v35, %v2269_v54 }
0x1403   :  { %v2268_v55 = vpop.xlane.xlu0 %2267 }
0x1404   :  { %v2270_v44 = vmul.f32 0.03125, %v2268_v55  ;;  %v2273_v45 = vmul.f32 %v2271_v42, %v2271_v42 }
0x1406   :  { %v2272_v48 = vsub.f32 %v2258_v38, %v2270_v44  ;;  %v2275_v49 = vsel %vm269_vm8, %v2273_v45, 0.0 }
0x1407   :  { %2276 = vadd.xlane.f32.xlu0 %v2275_v49 }
0x1408   :  { %v2274_v12 = vmul.f32 %v2272_v48, %v2272_v48 }
0x140a   :  { %v2278_v52 = vsel %vm269_vm8, %v2274_v12, 0.0 }
0x140b   :  { %2279 = vadd.xlane.f32.xlu1 %v2278_v52 }
0x1490   :  { %v2277_v53 = vpop.xlane.xlu0 %2276 }
0x1491   :  { %v2281_v56 = vmul.f32 0.03125, %v2277_v53 }
0x1493   :  { %v2283_v13 = vadd.f32 1e-05, %v2281_v56 }
0x1494   :  { %v2280_v57 = vpop.xlane.xlu1 %2279 }
0x1495   :  { %2957 = vrsqrt.f32 %v2283_v13  ;;  %v2282_v58 = vmul.f32 0.03125, %v2280_v57 }
0x1497   :  { %v2284_v59 = vadd.f32 1e-05, %v2282_v58 }
0x1499   :  { %2959 = vrsqrt.f32 %v2284_v59 }
0x14a2   :  { %v2958_v61 = vpop.eup %2957 }
0x14a3   :  { %v2287_v63 = vmul.f32 %v2958_v61, %v2271_v42 }
0x14a5   :  { %v2295_v4 = vmul.f32 %v2512_v62, %v2287_v63 }
0x14a6   :  { %v2960_v1 = vpop.eup %2959 }
0x14a7   :  { %v2288_v5 = vmul.f32 %v2960_v1, %v2272_v48  ;;  %v2303_v7 = vadd.f32 %v2513_v0, %v2295_v4 }
0x14a9   :  { %v2296_v9 = vmul.f32 %v2512_v62, %v2288_v5  ;;  %v2305_v6 = vmul.f32 %v3179_v47, %v2303_v7 }
0x14ab   :  { %v2304_v10 = vadd.f32 %v2513_v0, %v2296_v9  ;;  %2307 = vst.msk [vmem:[#allocation3] sm:$0xff] %vm269_vm8, %v2305_v6 }
0x14ad   :  { %v2306_v8 = vmul.f32 %v3177_v46, %v2304_v10 }
0x14af   :  { %2308 = vst.msk [vmem:[#allocation3 + $0x8] sm:$0xff] %vm269_vm8, %v2306_v8 }
0x14b0   :  { %2972 = shalt.err (!%p2969_p4)
}
0x14b1   :  { %s2998_s17 = smov 128  }
0x14b2   :  { %2320 = dma.vmem_to_hbm [thread:$0]  %s2315_s9, 256, %s3732_s18, [#allocation4], %s2998_s17, %s2998_s17, %s2991_s25  }
0x14b3   :  { %2981 = dma.done.wait [#allocation4], 256  }
0x14b4   :  { %2982 = vsyncadd [#allocation4], 4294967040 }
0x14b5   :  { %2324 = vsyncpa [#allocation4], 1 }

</bundles_post_ra>
